<compile_context>
chip_gen: v7x
topology: tpu7x:2x2x1
jax: 0.10.0
libtpu: 0.0.40
codegen_flags: <defaults>
</compile_context>

<pallas_src>
import jax
import jax.numpy as jnp
import numpy as np
from jax.experimental import pallas as pl
from jax.experimental.pallas import tpu as pltpu

# 48 MiB scoped VMEM: plenty for tm=512/tk=8192 int8 tiles, under v7x's 64 MiB physical,
# and far under v5e/v6e's 128 MiB.  (Per-gen tuning: v6e can go higher, v7x not much.)
VMEM_LIMIT_BYTES = 48 * 1024 * 1024


def _round_up(x, m):
    return ((x + m - 1) // m) * m


# ----------------------------------------------------------------------------
# Kernel 1: fused, block-sparse SAGE layer per destination node type
#   out = ReLU( sum_over_nonzero_blocks[ diag(1/deg_et) . (C_blk @ X_blk) @ W_l_et^T ]
#               + x_dst @ W_r_sum^T + b_sum )
#   C is raw int8 edge counts (exact); the mean normalization is the f32 1/deg scale.
# ----------------------------------------------------------------------------

def _sage_fused_kernel(bc_ref, eo_ref, nb_ref, c_ref, x_ref, dinv_ref, wlt_ref,
                       xd_ref, wrt_ref, b_ref, o_ref, acc_ref):
    i = pl.program_id(0)
    j = pl.program_id(1)

    @pl.when(j == 0)
    def _():
        # init accumulator with the root/self term: x_dst @ W_r_sum^T + b_sum
        acc_ref[...] = (
            jnp.dot(xd_ref[...], wrt_ref[...], preferred_element_type=jnp.float32)
            + b_ref[...]
        )

    # one adjacency block per (row-tile, j); skip blocks that hold no edges
    @pl.when(j < nb_ref[i])
    def _():
        agg = jnp.dot(c_ref[...].astype(jnp.bfloat16), x_ref[...],
                      preferred_element_type=jnp.float32)          # [tm, H]
        agg = agg * dinv_ref[0]                                    # exact mean (f32 row scale)
        # fold the per-edge-type W_l here (MXU has huge slack: kernel is A-HBM bound)
        acc_ref[...] += jnp.dot(agg.astype(jnp.bfloat16), wlt_ref[0],
                                preferred_element_type=jnp.float32)

    @pl.when(j == pl.num_programs(1) - 1)
    def _():
        o_ref[...] = jnp.maximum(acc_ref[...], 0.0).astype(o_ref.dtype)


def _build_dst_plan(edge_index_dict, num_nodes_dict, ets, d, tile_m, tile_k):
    """Hoisted, layer-independent per-dst-type prep: int8 counts, 1/deg, block-skip plan."""
    nd = num_nodes_dict[d]
    max_src = max(num_nodes_dict[et[0]] for et in ets)
    tk = min(tile_k, _round_up(max_src, 128))                  # slab width (lane multiple)
    tm = tile_m if nd > tile_m else _round_up(nd, 32)          # 32: int8 sublane packing
    nd_pad = _round_up(nd, tm)

    blocks, deg_list, blk_rows, slab_et = [], [], [], []
    for e, et in enumerate(ets):
        ns = num_nodes_dict[et[0]]
        src, dst = edge_index_dict[et][0], edge_index_dict[et][1]
        counts = jnp.zeros((nd, ns), jnp.float32).at[dst, src].add(1.0)
        deg = counts.sum(axis=1, keepdims=True)
        deg_list.append(jnp.where(deg > 0, 1.0 / jnp.maximum(deg, 1.0), 0.0))
        ns_pad = _round_up(ns, tk)                             # whole number of slabs per et
        blk_rows.append(ns_pad)
        blocks.append(jnp.pad(counts, ((0, 0), (0, ns_pad - ns))))
        slab_et += [e] * (ns_pad // tk)

    c_cat = jnp.pad(jnp.concatenate(blocks, axis=1), ((0, nd_pad - nd), (0, 0)))
    ns_cat = c_cat.shape[1]
    nslabs = ns_cat // tk
    ntiles = nd_pad // tm

    # int8 raw edge counts: exact and half the bytes of bf16 A on the mem-bound stream.
    # TODO(synk): >127 duplicate edges between one (dst,src) pair would clip (unrealistic).
    c_i8 = jnp.clip(c_cat, 0.0, 127.0).astype(jnp.int8)
    deg_inv = jnp.pad(jnp.stack(deg_list), ((0, 0), (0, nd_pad - nd), (0, 0)))  # [E,nd_pad,1]

    # Block-skip plan: which (row-tile, slab) adjacency blocks hold at least one edge.
    mask = (c_cat.reshape(ntiles, tm, nslabs, tk) != 0).any(axis=(1, 3))        # [ntiles,nslabs]
    nb = mask.sum(axis=1).astype(jnp.int32)
    order = jnp.argsort(jnp.logical_not(mask), axis=1, stable=True).astype(jnp.int32)
    last = jnp.take_along_axis(order, jnp.maximum(nb - 1, 0)[:, None], axis=1)
    j_ar = jnp.arange(nslabs, dtype=jnp.int32)[None, :]
    bc = jnp.where(j_ar < nb[:, None], order, last)   # pad = repeat last valid -> no re-DMA
    eo = jnp.asarray(slab_et, jnp.int32)[bc]          # edge-type id per (row-tile, j)
    # TODO(synk): grid_j extraction syncs the host; precompute on host when jitting.
    grid_j = max(1, int(jax.device_get(nb.max())))

    return dict(c_i8=c_i8, deg_inv=deg_inv,
                bc_flat=bc[:, :grid_j].reshape(-1), eo_flat=eo[:, :grid_j].reshape(-1),
                nb=nb, blk_rows=blk_rows, tm=tm, tk=tk, nd=nd, nd_pad=nd_pad, grid_j=grid_j)


def pallas_sage_fused(plan, x_cat, wlt_stack, x_dst, w_r_sum, b_sum, *, out_dtype=jnp.float32):
    """x_cat:[ns_cat,H] bf16 (per-et padded blocks), wlt_stack:[E,H,H], x_dst:[nd,H]."""
    c, dinv = plan["c_i8"], plan["deg_inv"]
    tm, tk, nd, nd_pad, gj = plan["tm"], plan["tk"], plan["nd"], plan["nd_pad"], plan["grid_j"]
    h = x_cat.shape[1]

    xd = jnp.pad(x_dst.astype(jnp.bfloat16), ((0, nd_pad - nd), (0, 0)))
    wrt = jnp.transpose(w_r_sum).astype(jnp.bfloat16)
    b2 = b_sum.reshape(1, h).astype(jnp.float32)
    # NOTE: padded dst rows compute ReLU(b_sum) garbage and are sliced off below; the
    # padded buffer is never aliased or donated.

    out = pl.pallas_call(
        _sage_fused_kernel,
        out_shape=jax.ShapeDtypeStruct((nd_pad, h), out_dtype),
        grid_spec=pltpu.PrefetchScalarGridSpec(
            num_scalar_prefetch=3,
            grid=(nd_pad // tm, gj),                      # reduction (slab) axis last
            in_specs=[
                pl.BlockSpec((tm, tk), lambda i, j, bc, eo, nb: (i, bc[i * gj + j])),   # C int8
                pl.BlockSpec((tk, h), lambda i, j, bc, eo, nb: (bc[i * gj + j], 0)),    # X bf16
                pl.BlockSpec((1, tm, 1), lambda i, j, bc, eo, nb: (eo[i * gj + j], i, 0)),  # 1/deg
                pl.BlockSpec((1, h, h), lambda i, j, bc, eo, nb: (eo[i * gj + j], 0, 0)),   # W_l^T
                pl.BlockSpec((tm, h), lambda i, j, bc, eo, nb: (i, 0)),                 # x_dst
                pl.BlockSpec((h, h), lambda i, j, bc, eo, nb: (0, 0)),                  # W_r_sum^T
                pl.BlockSpec((1, h), lambda i, j, bc, eo, nb: (0, 0)),                  # b_sum
            ],
            out_specs=pl.BlockSpec((tm, h), lambda i, j, bc, eo, nb: (i, 0)),  # resident over j
            scratch_shapes=[pltpu.VMEM((tm, h), jnp.float32)],                 # f32 accumulator
        ),
        compiler_params=pltpu.CompilerParams(
            dimension_semantics=("parallel", "arbitrary"),
            vmem_limit_bytes=VMEM_LIMIT_BYTES,
        ),
    )(plan["bc_flat"], plan["eo_flat"], plan["nb"],
      c, x_cat, dinv, wlt_stack, xd, wrt, b2)
    return out[:nd] if nd_pad != nd else out


# ----------------------------------------------------------------------------
# Kernel 2: embedding row gather, deep DMA pipeline, blocked for megacore
# ----------------------------------------------------------------------------

def pallas_embedding_lookup(table, idx, *, depth=32, rows_per_block=1024):
    """Row gather: table:[V,H] (stays in HBM), idx:[N] int -> [N,H]."""
    n = int(idx.shape[0])
    v, hd = table.shape
    idx = jnp.clip(idx.astype(jnp.int32), 0, v - 1)          # guard OOB ids

    # Block the lookups: >=2 blocks when possible (v7x megacore) and bounded VMEM output.
    rb = int(min(rows_per_block, max(8, _round_up(-(-n // 2), 8))))
    n_pad = _round_up(n, rb)
    if n_pad != n:
        idx = jnp.pad(idx, (0, n_pad - n))                   # padded ids gather row 0
    nblk = n_pad // rb
    d = max(1, min(depth, rb))                               # DMA pipeline depth

    def kernel(idx_ref, table_ref, o_ref, sem):
        base = pl.program_id(0) * rb

        def start(r, slot, row):
            pltpu.make_async_copy(
                table_ref.at[pl.ds(row, 1), :],
                o_ref.at[pl.ds(r, 1), :],
                sem.at[slot],
            ).start()

        for r in range(d):                                   # prime: d row DMAs in flight
            start(r, r, idx_ref[base + r])

        def body(r, carry):
            slot = r % d
            row = idx_ref[base + r]                          # exact descriptor for the wait
            nxt = r + d
            # hoist the next-index SMEM read above the wait (.wait() breaks sst->sld fwd)
            nxt_row = idx_ref[base + jnp.where(nxt < rb, nxt, 0)]
            pltpu.make_async_copy(
                table_ref.at[pl.ds(row, 1), :],
                o_ref.at[pl.ds(r, 1), :],
                sem.at[slot],
            ).wait()

            @pl.when(nxt < rb)
            def _():
                start(nxt, slot, nxt_row)

            return carry

        jax.lax.fori_loop(0, rb, body, 0)

    out = pl.pallas_call(
        kernel,
        out_shape=jax.ShapeDtypeStruct((n_pad, hd), table.dtype),
        grid_spec=pltpu.PrefetchScalarGridSpec(
            num_scalar_prefetch=1,
            grid=(nblk,),
            in_specs=[pl.BlockSpec(memory_space=pl.ANY)],    # table stays in HBM
            out_specs=pl.BlockSpec((rb, hd), lambda i, idx_ref: (i, 0)),
            scratch_shapes=[pltpu.SemaphoreType.DMA((d,))],
        ),
        compiler_params=pltpu.CompilerParams(
            dimension_semantics=("parallel",),
            vmem_limit_bytes=VMEM_LIMIT_BYTES,
        ),
    )(idx, table)
    # TODO(synk): for tens of thousands of lookups, stream the whole (bf16) table into
    # VMEM once and gather with jnp.take instead of 128-B row DMAs.
    return out[:n] if n_pad != n else out


# ----------------------------------------------------------------------------
# JAX glue: parameters, forward, pure-JAX reference
# ----------------------------------------------------------------------------

def build_normalized_adjacency(edge_index, num_dst, num_src):
    """Dense row-normalized adjacency A[dst, src] (reference path only)."""
    src, dst = edge_index[0], edge_index[1]
    counts = jnp.zeros((num_dst, num_src), jnp.float32).at[dst, src].add(1.0)
    deg = counts.sum(axis=1, keepdims=True)
    return jnp.where(deg > 0, counts / jnp.maximum(deg, 1.0), 0.0)


def init_params(key, metadata, hidden_channels=32, out_channels=32, num_layers=2,
                num_embeddings=100000, recipe_in_features=9):
    node_types, edge_types = metadata
    keys = iter(jax.random.split(key, 64))
    f32 = jnp.float32

    params = {"embeddings": {}}
    for nt in node_types:
        if nt != "recipe":
            params["embeddings"][nt] = 0.1 * jax.random.normal(
                next(keys), (num_embeddings, hidden_channels), f32)

    params["input_linear"] = {
        "w": 0.1 * jax.random.normal(next(keys), (hidden_channels, recipe_in_features), f32),
        "b": 0.1 * jax.random.normal(next(keys), (hidden_channels,), f32),
    }

    params["convs"] = []
    for _ in range(num_layers):
        layer = {}
        for et in edge_types:
            layer[et] = {
                "w_l": 0.1 * jax.random.normal(next(keys), (hidden_channels, hidden_channels), f32),
                "b_l": 0.1 * jax.random.normal(next(keys), (hidden_channels,), f32),
                "w_r": 0.1 * jax.random.normal(next(keys), (hidden_channels, hidden_channels), f32),
            }
        params["convs"].append(layer)

    # Heads used only by .predict() (not part of forward()); kept for shape parity.
    for name in ("lin_user", "lin_recipe"):
        params[name] = {
            "w": 0.1 * jax.random.normal(next(keys), (out_channels, hidden_channels), f32),
            "b": 0.1 * jax.random.normal(next(keys), (out_channels,), f32),
        }
    return params


def recipe_gnn_forward(params, x_dict, edge_index_dict, num_nodes_dict,
                       *, tile_m=512, tile_k=8192):
    # 1. input projections / embedding lookups
    h = {}
    for nt, x in x_dict.items():
        if nt == "recipe":
            # K=9, O=32: per review, this tiny masked-lane op is best left to XLA.
            w, b = params["input_linear"]["w"], params["input_linear"]["b"]
            h[nt] = jnp.dot(x, w.T, precision=jax.lax.Precision.HIGHEST) + b
        else:
            h[nt] = pallas_embedding_lookup(params["embeddings"][nt], x)

    # 2. per-dst-type, layer-independent prep (int8 counts, 1/deg, block-skip plan)
    dst_groups = {}
    for et in edge_index_dict:
        dst_groups.setdefault(et[2], []).append(et)
    plans = {d: _build_dst_plan(edge_index_dict, num_nodes_dict, ets, d, tile_m, tile_k)
             for d, ets in dst_groups.items()}

    # 3. stacked HeteroConv(SAGEConv, aggr='sum') layers: one fused Pallas kernel per
    #    destination node type per layer (W_l folded in-kernel; bf16 between layers).
    num_layers = len(params["convs"])
    for li, layer in enumerate(params["convs"]):
        prev = h
        out_dtype = jnp.float32 if li == num_layers - 1 else jnp.bfloat16
        new_h = {}
        for d, ets in dst_groups.items():
            plan = plans[d]
            xs = []
            for e, et in enumerate(ets):
                xsrc = prev[et[0]].astype(jnp.bfloat16)
                xs.append(jnp.pad(xsrc, ((0, plan["blk_rows"][e] - xsrc.shape[0]), (0, 0))))
            x_cat = jnp.concatenate(xs, axis=0) if len(xs) > 1 else xs[0]
            wlt_stack = jnp.stack([jnp.transpose(layer[et]["w_l"]) for et in ets]
                                  ).astype(jnp.bfloat16)
            w_r_sum = sum(layer[et]["w_r"] for et in ets)   # all W_r act on the same x_dst
            b_sum = sum(layer[et]["b_l"] for et in ets)
            new_h[d] = pallas_sage_fused(plan, x_cat, wlt_stack, prev[d], w_r_sum, b_sum,
                                         out_dtype=out_dtype)
        for nt in prev:
            if nt not in new_h:
                # node type with no incoming edges: HeteroConv leaves it unchanged,
                # forward() still applies ReLU (XLA glue; not hit in the demo graph).
                new_h[nt] = jnp.maximum(prev[nt], 0.0)
        h = new_h
    return h


def reference_forward(params, x_dict, edge_index_dict, num_nodes_dict):
    """Pure-JAX f32 reference for the correctness check."""
    hp = jax.lax.Precision.HIGHEST
    h = {}
    for nt, x in x_dict.items():
        if nt == "recipe":
            w, b = params["input_linear"]["w"], params["input_linear"]["b"]
            h[nt] = jnp.dot(x, w.T, precision=hp) + b
        else:
            h[nt] = params["embeddings"][nt][x]
    for layer in params["convs"]:
        prev = h
        updated = {}
        for et, p in layer.items():
            s, _, d = et
            a = build_normalized_adjacency(edge_index_dict[et], num_nodes_dict[d], num_nodes_dict[s])
            agg = jnp.dot(a, prev[s], precision=hp)
            out = (jnp.dot(agg, p["w_l"].T, precision=hp) + p["b_l"]
                   + jnp.dot(prev[d], p["w_r"].T, precision=hp))
            updated[d] = out if d not in updated else updated[d] + out
        for nt in prev:
            if nt not in updated:
                updated[nt] = prev[nt]
        h = {nt: jnp.maximum(v, 0.0) for nt, v in updated.items()}
    return h


# ----------------------------------------------------------------------------
# main
# ----------------------------------------------------------------------------

if __name__ == "__main__":
    metadata = (
        ["user", "recipe"],
        [("user", "rates", "recipe"), ("recipe", "rated_by", "user")],
    )
    hidden = 32
    n_user, n_recipe, n_edges = 192, 160, 512

    key = jax.random.PRNGKey(0)
    k_par, k_feat, k_uid, k_e1, k_e2 = jax.random.split(key, 5)

    params = init_params(k_par, metadata, hidden_channels=hidden, out_channels=hidden)

    x_dict = {
        "user": jax.random.randint(k_uid, (n_user,), 0, 100000, dtype=jnp.int32),
        "recipe": jax.random.normal(k_feat, (n_recipe, 9), jnp.float32),
    }
    # Edges only touch the first half of the recipes so several (row-tile, slab)
    # adjacency blocks are all-zero and the block-skip path is actually exercised.
    e_src = jax.random.randint(k_e1, (n_edges,), 0, n_user, dtype=jnp.int32)
    e_dst = jax.random.randint(k_e2, (n_edges,), 0, n_recipe // 2, dtype=jnp.int32)
    edge_index_dict = {
        ("user", "rates", "recipe"): jnp.stack([e_src, e_dst]),
        ("recipe", "rated_by", "user"): jnp.stack([e_dst, e_src]),
    }
    num_nodes_dict = {"user": n_user, "recipe": n_recipe}

    # Small tiles so the demo graph exercises multi-tile grids, the k-accumulation path
    # and the block-skip machinery (production defaults are tile_m=512, tile_k=8192).
    out = recipe_gnn_forward(params, x_dict, edge_index_dict, num_nodes_dict,
                             tile_m=64, tile_k=128)
    out = jax.block_until_ready(out)

    ref = reference_forward(params, x_dict, edge_index_dict, num_nodes_dict)
    # tolerance sized for bf16 matmul operands / bf16 inter-layer activations vs f32 ref
    for nt in out:
        np.testing.assert_allclose(np.asarray(out[nt], dtype=np.float32),
                                   np.asarray(ref[nt], dtype=np.float32),
                                   rtol=3e-2, atol=3e-2)

    print("KERNEL_OK")
</pallas_src>

<mosaic_0001>
module attributes {stable_mosaic.version = 11 : i64} {
  func.func @kernel(%arg0: i32, %arg1: memref<192xi32, #tpu.memory_space<smem>>, %arg2: memref<100000x32xf32, #tpu.memory_space<any>>, %arg3: memref<96x32xf32, #tpu.memory_space<vmem>>, %arg4: memref<32x!tpu.dma_semaphore, #tpu.memory_space<semaphore_mem>>) attributes {dimension_semantics = [#tpu.dimension_semantics<parallel>], iteration_bounds = array<i64: 2>, scalar_prefetch = 1 : i64, scratch_operands = 1 : i64, tpu.core_type = #tpu.core_type<tc>, window_params = [{}, {transform_indices = @transform_1, window_bounds = array<i64: 96, 32>}]} {
    %c96_i32 = arith.constant 96 : i32
    %0 = arith.muli %arg0, %c96_i32 : i32
    %c0_i32 = arith.constant 0 : i32
    %1 = arith.addi %0, %c0_i32 : i32
    %2 = arith.index_cast %1 : i32 to index
    %3 = memref.load %arg1[%2] : memref<192xi32, #tpu.memory_space<smem>>
    %c0_i32_0 = arith.constant 0 : i32
    %c0_i32_1 = arith.constant 0 : i32
    %4 = tpu.memref_slice %arg2[%3, %c0_i32_1] : memref<100000x32xf32, #tpu.memory_space<any>> -> memref<1x32xf32, #tpu.memory_space<any>>
    %c0_i32_2 = arith.constant 0 : i32
    %c0_i32_3 = arith.constant 0 : i32
    %5 = tpu.memref_slice %arg3[%c0_i32_2, %c0_i32_3] : memref<96x32xf32, #tpu.memory_space<vmem>> -> memref<1x32xf32, #tpu.memory_space<vmem>>
    %6 = tpu.memref_slice %arg4[%c0_i32_0] : memref<32x!tpu.dma_semaphore, #tpu.memory_space<semaphore_mem>> -> memref<1x!tpu.dma_semaphore, #tpu.memory_space<semaphore_mem>>
    %7 = tpu.memref_squeeze %6 : memref<1x!tpu.dma_semaphore, #tpu.memory_space<semaphore_mem>> -> memref<!tpu.dma_semaphore, #tpu.memory_space<semaphore_mem>>
    tpu.enqueue_dma source(%4 : memref<1x32xf32, #tpu.memory_space<any>>) target(%5 : memref<1x32xf32, #tpu.memory_space<vmem>>) target_semaphore(%7 : memref<!tpu.dma_semaphore, #tpu.memory_space<semaphore_mem>>)
    %c1_i32 = arith.constant 1 : i32
    %8 = arith.addi %0, %c1_i32 : i32
    %9 = arith.index_cast %8 : i32 to index
    %10 = memref.load %arg1[%9] : memref<192xi32, #tpu.memory_space<smem>>
    %c1_i32_4 = arith.constant 1 : i32
    %c0_i32_5 = arith.constant 0 : i32
    %11 = tpu.memref_slice %arg2[%10, %c0_i32_5] : memref<100000x32xf32, #tpu.memory_space<any>> -> memref<1x32xf32, #tpu.memory_space<any>>
    %c1_i32_6 = arith.constant 1 : i32
    %c0_i32_7 = arith.constant 0 : i32
    %12 = tpu.memref_slice %arg3[%c1_i32_6, %c0_i32_7] : memref<96x32xf32, #tpu.memory_space<vmem>> -> memref<1x32xf32, #tpu.memory_space<vmem>>
    %13 = tpu.memref_slice %arg4[%c1_i32_4] : memref<32x!tpu.dma_semaphore, #tpu.memory_space<semaphore_mem>> -> memref<1x!tpu.dma_semaphore, #tpu.memory_space<semaphore_mem>>
    %14 = tpu.memref_squeeze %13 : memref<1x!tpu.dma_semaphore, #tpu.memory_space<semaphore_mem>> -> memref<!tpu.dma_semaphore, #tpu.memory_space<semaphore_mem>>
    tpu.enqueue_dma source(%11 : memref<1x32xf32, #tpu.memory_space<any>>) target(%12 : memref<1x32xf32, #tpu.memory_space<vmem>>) target_semaphore(%14 : memref<!tpu.dma_semaphore, #tpu.memory_space<semaphore_mem>>)
    %c2_i32 = arith.constant 2 : i32
    %15 = arith.addi %0, %c2_i32 : i32
    %16 = arith.index_cast %15 : i32 to index
    %17 = memref.load %arg1[%16] : memref<192xi32, #tpu.memory_space<smem>>
    %c2_i32_8 = arith.constant 2 : i32
    %c0_i32_9 = arith.constant 0 : i32
    %18 = tpu.memref_slice %arg2[%17, %c0_i32_9] : memref<100000x32xf32, #tpu.memory_space<any>> -> memref<1x32xf32, #tpu.memory_space<any>>
    %c2_i32_10 = arith.constant 2 : i32
    %c0_i32_11 = arith.constant 0 : i32
    %19 = tpu.memref_slice %arg3[%c2_i32_10, %c0_i32_11] : memref<96x32xf32, #tpu.memory_space<vmem>> -> memref<1x32xf32, #tpu.memory_space<vmem>>
    %20 = tpu.memref_slice %arg4[%c2_i32_8] : memref<32x!tpu.dma_semaphore, #tpu.memory_space<semaphore_mem>> -> memref<1x!tpu.dma_semaphore, #tpu.memory_space<semaphore_mem>>
    %21 = tpu.memref_squeeze %20 : memref<1x!tpu.dma_semaphore, #tpu.memory_space<semaphore_mem>> -> memref<!tpu.dma_semaphore, #tpu.memory_space<semaphore_mem>>
    tpu.enqueue_dma source(%18 : memref<1x32xf32, #tpu.memory_space<any>>) target(%19 : memref<1x32xf32, #tpu.memory_space<vmem>>) target_semaphore(%21 : memref<!tpu.dma_semaphore, #tpu.memory_space<semaphore_mem>>)
    %c3_i32 = arith.constant 3 : i32
    %22 = arith.addi %0, %c3_i32 : i32
    %23 = arith.index_cast %22 : i32 to index
    %24 = memref.load %arg1[%23] : memref<192xi32, #tpu.memory_space<smem>>
    %c3_i32_12 = arith.constant 3 : i32
    %c0_i32_13 = arith.constant 0 : i32
    %25 = tpu.memref_slice %arg2[%24, %c0_i32_13] : memref<100000x32xf32, #tpu.memory_space<any>> -> memref<1x32xf32, #tpu.memory_space<any>>
    %c3_i32_14 = arith.constant 3 : i32
    %c0_i32_15 = arith.constant 0 : i32
    %26 = tpu.memref_slice %arg3[%c3_i32_14, %c0_i32_15] : memref<96x32xf32, #tpu.memory_space<vmem>> -> memref<1x32xf32, #tpu.memory_space<vmem>>
    %27 = tpu.memref_slice %arg4[%c3_i32_12] : memref<32x!tpu.dma_semaphore, #tpu.memory_space<semaphore_mem>> -> memref<1x!tpu.dma_semaphore, #tpu.memory_space<semaphore_mem>>
    %28 = tpu.memref_squeeze %27 : memref<1x!tpu.dma_semaphore, #tpu.memory_space<semaphore_mem>> -> memref<!tpu.dma_semaphore, #tpu.memory_space<semaphore_mem>>
    tpu.enqueue_dma source(%25 : memref<1x32xf32, #tpu.memory_space<any>>) target(%26 : memref<1x32xf32, #tpu.memory_space<vmem>>) target_semaphore(%28 : memref<!tpu.dma_semaphore, #tpu.memory_space<semaphore_mem>>)
    %c4_i32 = arith.constant 4 : i32
    %29 = arith.addi %0, %c4_i32 : i32
    %30 = arith.index_cast %29 : i32 to index
    %31 = memref.load %arg1[%30] : memref<192xi32, #tpu.memory_space<smem>>
    %c4_i32_16 = arith.constant 4 : i32
    %c0_i32_17 = arith.constant 0 : i32
    %32 = tpu.memref_slice %arg2[%31, %c0_i32_17] : memref<100000x32xf32, #tpu.memory_space<any>> -> memref<1x32xf32, #tpu.memory_space<any>>
    %c4_i32_18 = arith.constant 4 : i32
    %c0_i32_19 = arith.constant 0 : i32
    %33 = tpu.memref_slice %arg3[%c4_i32_18, %c0_i32_19] : memref<96x32xf32, #tpu.memory_space<vmem>> -> memref<1x32xf32, #tpu.memory_space<vmem>>
    %34 = tpu.memref_slice %arg4[%c4_i32_16] : memref<32x!tpu.dma_semaphore, #tpu.memory_space<semaphore_mem>> -> memref<1x!tpu.dma_semaphore, #tpu.memory_space<semaphore_mem>>
    %35 = tpu.memref_squeeze %34 : memref<1x!tpu.dma_semaphore, #tpu.memory_space<semaphore_mem>> -> memref<!tpu.dma_semaphore, #tpu.memory_space<semaphore_mem>>
    tpu.enqueue_dma source(%32 : memref<1x32xf32, #tpu.memory_space<any>>) target(%33 : memref<1x32xf32, #tpu.memory_space<vmem>>) target_semaphore(%35 : memref<!tpu.dma_semaphore, #tpu.memory_space<semaphore_mem>>)
    %c5_i32 = arith.constant 5 : i32
    %36 = arith.addi %0, %c5_i32 : i32
    %37 = arith.index_cast %36 : i32 to index
    %38 = memref.load %arg1[%37] : memref<192xi32, #tpu.memory_space<smem>>
    %c5_i32_20 = arith.constant 5 : i32
    %c0_i32_21 = arith.constant 0 : i32
    %39 = tpu.memref_slice %arg2[%38, %c0_i32_21] : memref<100000x32xf32, #tpu.memory_space<any>> -> memref<1x32xf32, #tpu.memory_space<any>>
    %c5_i32_22 = arith.constant 5 : i32
    %c0_i32_23 = arith.constant 0 : i32
    %40 = tpu.memref_slice %arg3[%c5_i32_22, %c0_i32_23] : memref<96x32xf32, #tpu.memory_space<vmem>> -> memref<1x32xf32, #tpu.memory_space<vmem>>
    %41 = tpu.memref_slice %arg4[%c5_i32_20] : memref<32x!tpu.dma_semaphore, #tpu.memory_space<semaphore_mem>> -> memref<1x!tpu.dma_semaphore, #tpu.memory_space<semaphore_mem>>
    %42 = tpu.memref_squeeze %41 : memref<1x!tpu.dma_semaphore, #tpu.memory_space<semaphore_mem>> -> memref<!tpu.dma_semaphore, #tpu.memory_space<semaphore_mem>>
    tpu.enqueue_dma source(%39 : memref<1x32xf32, #tpu.memory_space<any>>) target(%40 : memref<1x32xf32, #tpu.memory_space<vmem>>) target_semaphore(%42 : memref<!tpu.dma_semaphore, #tpu.memory_space<semaphore_mem>>)
    %c6_i32 = arith.constant 6 : i32
    %43 = arith.addi %0, %c6_i32 : i32
    %44 = arith.index_cast %43 : i32 to index
    %45 = memref.load %arg1[%44] : memref<192xi32, #tpu.memory_space<smem>>
    %c6_i32_24 = arith.constant 6 : i32
    %c0_i32_25 = arith.constant 0 : i32
    %46 = tpu.memref_slice %arg2[%45, %c0_i32_25] : memref<100000x32xf32, #tpu.memory_space<any>> -> memref<1x32xf32, #tpu.memory_space<any>>
    %c6_i32_26 = arith.constant 6 : i32
    %c0_i32_27 = arith.constant 0 : i32
    %47 = tpu.memref_slice %arg3[%c6_i32_26, %c0_i32_27] : memref<96x32xf32, #tpu.memory_space<vmem>> -> memref<1x32xf32, #tpu.memory_space<vmem>>
    %48 = tpu.memref_slice %arg4[%c6_i32_24] : memref<32x!tpu.dma_semaphore, #tpu.memory_space<semaphore_mem>> -> memref<1x!tpu.dma_semaphore, #tpu.memory_space<semaphore_mem>>
    %49 = tpu.memref_squeeze %48 : memref<1x!tpu.dma_semaphore, #tpu.memory_space<semaphore_mem>> -> memref<!tpu.dma_semaphore, #tpu.memory_space<semaphore_mem>>
    tpu.enqueue_dma source(%46 : memref<1x32xf32, #tpu.memory_space<any>>) target(%47 : memref<1x32xf32, #tpu.memory_space<vmem>>) target_semaphore(%49 : memref<!tpu.dma_semaphore, #tpu.memory_space<semaphore_mem>>)
    %c7_i32 = arith.constant 7 : i32
    %50 = arith.addi %0, %c7_i32 : i32
    %51 = arith.index_cast %50 : i32 to index
    %52 = memref.load %arg1[%51] : memref<192xi32, #tpu.memory_space<smem>>
    %c7_i32_28 = arith.constant 7 : i32
    %c0_i32_29 = arith.constant 0 : i32
    %53 = tpu.memref_slice %arg2[%52, %c0_i32_29] : memref<100000x32xf32, #tpu.memory_space<any>> -> memref<1x32xf32, #tpu.memory_space<any>>
    %c7_i32_30 = arith.constant 7 : i32
    %c0_i32_31 = arith.constant 0 : i32
    %54 = tpu.memref_slice %arg3[%c7_i32_30, %c0_i32_31] : memref<96x32xf32, #tpu.memory_space<vmem>> -> memref<1x32xf32, #tpu.memory_space<vmem>>
    %55 = tpu.memref_slice %arg4[%c7_i32_28] : memref<32x!tpu.dma_semaphore, #tpu.memory_space<semaphore_mem>> -> memref<1x!tpu.dma_semaphore, #tpu.memory_space<semaphore_mem>>
    %56 = tpu.memref_squeeze %55 : memref<1x!tpu.dma_semaphore, #tpu.memory_space<semaphore_mem>> -> memref<!tpu.dma_semaphore, #tpu.memory_space<semaphore_mem>>
    tpu.enqueue_dma source(%53 : memref<1x32xf32, #tpu.memory_space<any>>) target(%54 : memref<1x32xf32, #tpu.memory_space<vmem>>) target_semaphore(%56 : memref<!tpu.dma_semaphore, #tpu.memory_space<semaphore_mem>>)
    %c8_i32 = arith.constant 8 : i32
    %57 = arith.addi %0, %c8_i32 : i32
    %58 = arith.index_cast %57 : i32 to index
    %59 = memref.load %arg1[%58] : memref<192xi32, #tpu.memory_space<smem>>
    %c8_i32_32 = arith.constant 8 : i32
    %c0_i32_33 = arith.constant 0 : i32
    %60 = tpu.memref_slice %arg2[%59, %c0_i32_33] : memref<100000x32xf32, #tpu.memory_space<any>> -> memref<1x32xf32, #tpu.memory_space<any>>
    %c8_i32_34 = arith.constant 8 : i32
    %c0_i32_35 = arith.constant 0 : i32
    %61 = tpu.memref_slice %arg3[%c8_i32_34, %c0_i32_35] : memref<96x32xf32, #tpu.memory_space<vmem>> -> memref<1x32xf32, #tpu.memory_space<vmem>>
    %62 = tpu.memref_slice %arg4[%c8_i32_32] : memref<32x!tpu.dma_semaphore, #tpu.memory_space<semaphore_mem>> -> memref<1x!tpu.dma_semaphore, #tpu.memory_space<semaphore_mem>>
    %63 = tpu.memref_squeeze %62 : memref<1x!tpu.dma_semaphore, #tpu.memory_space<semaphore_mem>> -> memref<!tpu.dma_semaphore, #tpu.memory_space<semaphore_mem>>
    tpu.enqueue_dma source(%60 : memref<1x32xf32, #tpu.memory_space<any>>) target(%61 : memref<1x32xf32, #tpu.memory_space<vmem>>) target_semaphore(%63 : memref<!tpu.dma_semaphore, #tpu.memory_space<semaphore_mem>>)
    %c9_i32 = arith.constant 9 : i32
    %64 = arith.addi %0, %c9_i32 : i32
    %65 = arith.index_cast %64 : i32 to index
    %66 = memref.load %arg1[%65] : memref<192xi32, #tpu.memory_space<smem>>
    %c9_i32_36 = arith.constant 9 : i32
    %c0_i32_37 = arith.constant 0 : i32
    %67 = tpu.memref_slice %arg2[%66, %c0_i32_37] : memref<100000x32xf32, #tpu.memory_space<any>> -> memref<1x32xf32, #tpu.memory_space<any>>
    %c9_i32_38 = arith.constant 9 : i32
    %c0_i32_39 = arith.constant 0 : i32
    %68 = tpu.memref_slice %arg3[%c9_i32_38, %c0_i32_39] : memref<96x32xf32, #tpu.memory_space<vmem>> -> memref<1x32xf32, #tpu.memory_space<vmem>>
    %69 = tpu.memref_slice %arg4[%c9_i32_36] : memref<32x!tpu.dma_semaphore, #tpu.memory_space<semaphore_mem>> -> memref<1x!tpu.dma_semaphore, #tpu.memory_space<semaphore_mem>>
    %70 = tpu.memref_squeeze %69 : memref<1x!tpu.dma_semaphore, #tpu.memory_space<semaphore_mem>> -> memref<!tpu.dma_semaphore, #tpu.memory_space<semaphore_mem>>
    tpu.enqueue_dma source(%67 : memref<1x32xf32, #tpu.memory_space<any>>) target(%68 : memref<1x32xf32, #tpu.memory_space<vmem>>) target_semaphore(%70 : memref<!tpu.dma_semaphore, #tpu.memory_space<semaphore_mem>>)
    %c10_i32 = arith.constant 10 : i32
    %71 = arith.addi %0, %c10_i32 : i32
    %72 = arith.index_cast %71 : i32 to index
    %73 = memref.load %arg1[%72] : memref<192xi32, #tpu.memory_space<smem>>
    %c10_i32_40 = arith.constant 10 : i32
    %c0_i32_41 = arith.constant 0 : i32
    %74 = tpu.memref_slice %arg2[%73, %c0_i32_41] : memref<100000x32xf32, #tpu.memory_space<any>> -> memref<1x32xf32, #tpu.memory_space<any>>
    %c10_i32_42 = arith.constant 10 : i32
    %c0_i32_43 = arith.constant 0 : i32
    %75 = tpu.memref_slice %arg3[%c10_i32_42, %c0_i32_43] : memref<96x32xf32, #tpu.memory_space<vmem>> -> memref<1x32xf32, #tpu.memory_space<vmem>>
    %76 = tpu.memref_slice %arg4[%c10_i32_40] : memref<32x!tpu.dma_semaphore, #tpu.memory_space<semaphore_mem>> -> memref<1x!tpu.dma_semaphore, #tpu.memory_space<semaphore_mem>>
    %77 = tpu.memref_squeeze %76 : memref<1x!tpu.dma_semaphore, #tpu.memory_space<semaphore_mem>> -> memref<!tpu.dma_semaphore, #tpu.memory_space<semaphore_mem>>
    tpu.enqueue_dma source(%74 : memref<1x32xf32, #tpu.memory_space<any>>) target(%75 : memref<1x32xf32, #tpu.memory_space<vmem>>) target_semaphore(%77 : memref<!tpu.dma_semaphore, #tpu.memory_space<semaphore_mem>>)
    %c11_i32 = arith.constant 11 : i32
    %78 = arith.addi %0, %c11_i32 : i32
    %79 = arith.index_cast %78 : i32 to index
    %80 = memref.load %arg1[%79] : memref<192xi32, #tpu.memory_space<smem>>
    %c11_i32_44 = arith.constant 11 : i32
    %c0_i32_45 = arith.constant 0 : i32
    %81 = tpu.memref_slice %arg2[%80, %c0_i32_45] : memref<100000x32xf32, #tpu.memory_space<any>> -> memref<1x32xf32, #tpu.memory_space<any>>
    %c11_i32_46 = arith.constant 11 : i32
    %c0_i32_47 = arith.constant 0 : i32
    %82 = tpu.memref_slice %arg3[%c11_i32_46, %c0_i32_47] : memref<96x32xf32, #tpu.memory_space<vmem>> -> memref<1x32xf32, #tpu.memory_space<vmem>>
    %83 = tpu.memref_slice %arg4[%c11_i32_44] : memref<32x!tpu.dma_semaphore, #tpu.memory_space<semaphore_mem>> -> memref<1x!tpu.dma_semaphore, #tpu.memory_space<semaphore_mem>>
    %84 = tpu.memref_squeeze %83 : memref<1x!tpu.dma_semaphore, #tpu.memory_space<semaphore_mem>> -> memref<!tpu.dma_semaphore, #tpu.memory_space<semaphore_mem>>
    tpu.enqueue_dma source(%81 : memref<1x32xf32, #tpu.memory_space<any>>) target(%82 : memref<1x32xf32, #tpu.memory_space<vmem>>) target_semaphore(%84 : memref<!tpu.dma_semaphore, #tpu.memory_space<semaphore_mem>>)
    %c12_i32 = arith.constant 12 : i32
    %85 = arith.addi %0, %c12_i32 : i32
    %86 = arith.index_cast %85 : i32 to index
    %87 = memref.load %arg1[%86] : memref<192xi32, #tpu.memory_space<smem>>
    %c12_i32_48 = arith.constant 12 : i32
    %c0_i32_49 = arith.constant 0 : i32
    %88 = tpu.memref_slice %arg2[%87, %c0_i32_49] : memref<100000x32xf32, #tpu.memory_space<any>> -> memref<1x32xf32, #tpu.memory_space<any>>
    %c12_i32_50 = arith.constant 12 : i32
    %c0_i32_51 = arith.constant 0 : i32
    %89 = tpu.memref_slice %arg3[%c12_i32_50, %c0_i32_51] : memref<96x32xf32, #tpu.memory_space<vmem>> -> memref<1x32xf32, #tpu.memory_space<vmem>>
    %90 = tpu.memref_slice %arg4[%c12_i32_48] : memref<32x!tpu.dma_semaphore, #tpu.memory_space<semaphore_mem>> -> memref<1x!tpu.dma_semaphore, #tpu.memory_space<semaphore_mem>>
    %91 = tpu.memref_squeeze %90 : memref<1x!tpu.dma_semaphore, #tpu.memory_space<semaphore_mem>> -> memref<!tpu.dma_semaphore, #tpu.memory_space<semaphore_mem>>
    tpu.enqueue_dma source(%88 : memref<1x32xf32, #tpu.memory_space<any>>) target(%89 : memref<1x32xf32, #tpu.memory_space<vmem>>) target_semaphore(%91 : memref<!tpu.dma_semaphore, #tpu.memory_space<semaphore_mem>>)
    %c13_i32 = arith.constant 13 : i32
    %92 = arith.addi %0, %c13_i32 : i32
    %93 = arith.index_cast %92 : i32 to index
    %94 = memref.load %arg1[%93] : memref<192xi32, #tpu.memory_space<smem>>
    %c13_i32_52 = arith.constant 13 : i32
    %c0_i32_53 = arith.constant 0 : i32
    %95 = tpu.memref_slice %arg2[%94, %c0_i32_53] : memref<100000x32xf32, #tpu.memory_space<any>> -> memref<1x32xf32, #tpu.memory_space<any>>
    %c13_i32_54 = arith.constant 13 : i32
    %c0_i32_55 = arith.constant 0 : i32
    %96 = tpu.memref_slice %arg3[%c13_i32_54, %c0_i32_55] : memref<96x32xf32, #tpu.memory_space<vmem>> -> memref<1x32xf32, #tpu.memory_space<vmem>>
    %97 = tpu.memref_slice %arg4[%c13_i32_52] : memref<32x!tpu.dma_semaphore, #tpu.memory_space<semaphore_mem>> -> memref<1x!tpu.dma_semaphore, #tpu.memory_space<semaphore_mem>>
    %98 = tpu.memref_squeeze %97 : memref<1x!tpu.dma_semaphore, #tpu.memory_space<semaphore_mem>> -> memref<!tpu.dma_semaphore, #tpu.memory_space<semaphore_mem>>
    tpu.enqueue_dma source(%95 : memref<1x32xf32, #tpu.memory_space<any>>) target(%96 : memref<1x32xf32, #tpu.memory_space<vmem>>) target_semaphore(%98 : memref<!tpu.dma_semaphore, #tpu.memory_space<semaphore_mem>>)
    %c14_i32 = arith.constant 14 : i32
    %99 = arith.addi %0, %c14_i32 : i32
    %100 = arith.index_cast %99 : i32 to index
    %101 = memref.load %arg1[%100] : memref<192xi32, #tpu.memory_space<smem>>
    %c14_i32_56 = arith.constant 14 : i32
    %c0_i32_57 = arith.constant 0 : i32
    %102 = tpu.memref_slice %arg2[%101, %c0_i32_57] : memref<100000x32xf32, #tpu.memory_space<any>> -> memref<1x32xf32, #tpu.memory_space<any>>
    %c14_i32_58 = arith.constant 14 : i32
    %c0_i32_59 = arith.constant 0 : i32
    %103 = tpu.memref_slice %arg3[%c14_i32_58, %c0_i32_59] : memref<96x32xf32, #tpu.memory_space<vmem>> -> memref<1x32xf32, #tpu.memory_space<vmem>>
    %104 = tpu.memref_slice %arg4[%c14_i32_56] : memref<32x!tpu.dma_semaphore, #tpu.memory_space<semaphore_mem>> -> memref<1x!tpu.dma_semaphore, #tpu.memory_space<semaphore_mem>>
    %105 = tpu.memref_squeeze %104 : memref<1x!tpu.dma_semaphore, #tpu.memory_space<semaphore_mem>> -> memref<!tpu.dma_semaphore, #tpu.memory_space<semaphore_mem>>
    tpu.enqueue_dma source(%102 : memref<1x32xf32, #tpu.memory_space<any>>) target(%103 : memref<1x32xf32, #tpu.memory_space<vmem>>) target_semaphore(%105 : memref<!tpu.dma_semaphore, #tpu.memory_space<semaphore_mem>>)
    %c15_i32 = arith.constant 15 : i32
    %106 = arith.addi %0, %c15_i32 : i32
    %107 = arith.index_cast %106 : i32 to index
    %108 = memref.load %arg1[%107] : memref<192xi32, #tpu.memory_space<smem>>
    %c15_i32_60 = arith.constant 15 : i32
    %c0_i32_61 = arith.constant 0 : i32
    %109 = tpu.memref_slice %arg2[%108, %c0_i32_61] : memref<100000x32xf32, #tpu.memory_space<any>> -> memref<1x32xf32, #tpu.memory_space<any>>
    %c15_i32_62 = arith.constant 15 : i32
    %c0_i32_63 = arith.constant 0 : i32
    %110 = tpu.memref_slice %arg3[%c15_i32_62, %c0_i32_63] : memref<96x32xf32, #tpu.memory_space<vmem>> -> memref<1x32xf32, #tpu.memory_space<vmem>>
    %111 = tpu.memref_slice %arg4[%c15_i32_60] : memref<32x!tpu.dma_semaphore, #tpu.memory_space<semaphore_mem>> -> memref<1x!tpu.dma_semaphore, #tpu.memory_space<semaphore_mem>>
    %112 = tpu.memref_squeeze %111 : memref<1x!tpu.dma_semaphore, #tpu.memory_space<semaphore_mem>> -> memref<!tpu.dma_semaphore, #tpu.memory_space<semaphore_mem>>
    tpu.enqueue_dma source(%109 : memref<1x32xf32, #tpu.memory_space<any>>) target(%110 : memref<1x32xf32, #tpu.memory_space<vmem>>) target_semaphore(%112 : memref<!tpu.dma_semaphore, #tpu.memory_space<semaphore_mem>>)
    %c16_i32 = arith.constant 16 : i32
    %113 = arith.addi %0, %c16_i32 : i32
    %114 = arith.index_cast %113 : i32 to index
    %115 = memref.load %arg1[%114] : memref<192xi32, #tpu.memory_space<smem>>
    %c16_i32_64 = arith.constant 16 : i32
    %c0_i32_65 = arith.constant 0 : i32
    %116 = tpu.memref_slice %arg2[%115, %c0_i32_65] : memref<100000x32xf32, #tpu.memory_space<any>> -> memref<1x32xf32, #tpu.memory_space<any>>
    %c16_i32_66 = arith.constant 16 : i32
    %c0_i32_67 = arith.constant 0 : i32
    %117 = tpu.memref_slice %arg3[%c16_i32_66, %c0_i32_67] : memref<96x32xf32, #tpu.memory_space<vmem>> -> memref<1x32xf32, #tpu.memory_space<vmem>>
    %118 = tpu.memref_slice %arg4[%c16_i32_64] : memref<32x!tpu.dma_semaphore, #tpu.memory_space<semaphore_mem>> -> memref<1x!tpu.dma_semaphore, #tpu.memory_space<semaphore_mem>>
    %119 = tpu.memref_squeeze %118 : memref<1x!tpu.dma_semaphore, #tpu.memory_space<semaphore_mem>> -> memref<!tpu.dma_semaphore, #tpu.memory_space<semaphore_mem>>
    tpu.enqueue_dma source(%116 : memref<1x32xf32, #tpu.memory_space<any>>) target(%117 : memref<1x32xf32, #tpu.memory_space<vmem>>) target_semaphore(%119 : memref<!tpu.dma_semaphore, #tpu.memory_space<semaphore_mem>>)
    %c17_i32 = arith.constant 17 : i32
    %120 = arith.addi %0, %c17_i32 : i32
    %121 = arith.index_cast %120 : i32 to index
    %122 = memref.load %arg1[%121] : memref<192xi32, #tpu.memory_space<smem>>
    %c17_i32_68 = arith.constant 17 : i32
    %c0_i32_69 = arith.constant 0 : i32
    %123 = tpu.memref_slice %arg2[%122, %c0_i32_69] : memref<100000x32xf32, #tpu.memory_space<any>> -> memref<1x32xf32, #tpu.memory_space<any>>
    %c17_i32_70 = arith.constant 17 : i32
    %c0_i32_71 = arith.constant 0 : i32
    %124 = tpu.memref_slice %arg3[%c17_i32_70, %c0_i32_71] : memref<96x32xf32, #tpu.memory_space<vmem>> -> memref<1x32xf32, #tpu.memory_space<vmem>>
    %125 = tpu.memref_slice %arg4[%c17_i32_68] : memref<32x!tpu.dma_semaphore, #tpu.memory_space<semaphore_mem>> -> memref<1x!tpu.dma_semaphore, #tpu.memory_space<semaphore_mem>>
    %126 = tpu.memref_squeeze %125 : memref<1x!tpu.dma_semaphore, #tpu.memory_space<semaphore_mem>> -> memref<!tpu.dma_semaphore, #tpu.memory_space<semaphore_mem>>
    tpu.enqueue_dma source(%123 : memref<1x32xf32, #tpu.memory_space<any>>) target(%124 : memref<1x32xf32, #tpu.memory_space<vmem>>) target_semaphore(%126 : memref<!tpu.dma_semaphore, #tpu.memory_space<semaphore_mem>>)
    %c18_i32 = arith.constant 18 : i32
    %127 = arith.addi %0, %c18_i32 : i32
    %128 = arith.index_cast %127 : i32 to index
    %129 = memref.load %arg1[%128] : memref<192xi32, #tpu.memory_space<smem>>
    %c18_i32_72 = arith.constant 18 : i32
    %c0_i32_73 = arith.constant 0 : i32
    %130 = tpu.memref_slice %arg2[%129, %c0_i32_73] : memref<100000x32xf32, #tpu.memory_space<any>> -> memref<1x32xf32, #tpu.memory_space<any>>
    %c18_i32_74 = arith.constant 18 : i32
    %c0_i32_75 = arith.constant 0 : i32
    %131 = tpu.memref_slice %arg3[%c18_i32_74, %c0_i32_75] : memref<96x32xf32, #tpu.memory_space<vmem>> -> memref<1x32xf32, #tpu.memory_space<vmem>>
    %132 = tpu.memref_slice %arg4[%c18_i32_72] : memref<32x!tpu.dma_semaphore, #tpu.memory_space<semaphore_mem>> -> memref<1x!tpu.dma_semaphore, #tpu.memory_space<semaphore_mem>>
    %133 = tpu.memref_squeeze %132 : memref<1x!tpu.dma_semaphore, #tpu.memory_space<semaphore_mem>> -> memref<!tpu.dma_semaphore, #tpu.memory_space<semaphore_mem>>
    tpu.enqueue_dma source(%130 : memref<1x32xf32, #tpu.memory_space<any>>) target(%131 : memref<1x32xf32, #tpu.memory_space<vmem>>) target_semaphore(%133 : memref<!tpu.dma_semaphore, #tpu.memory_space<semaphore_mem>>)
    %c19_i32 = arith.constant 19 : i32
    %134 = arith.addi %0, %c19_i32 : i32
    %135 = arith.index_cast %134 : i32 to index
    %136 = memref.load %arg1[%135] : memref<192xi32, #tpu.memory_space<smem>>
    %c19_i32_76 = arith.constant 19 : i32
    %c0_i32_77 = arith.constant 0 : i32
    %137 = tpu.memref_slice %arg2[%136, %c0_i32_77] : memref<100000x32xf32, #tpu.memory_space<any>> -> memref<1x32xf32, #tpu.memory_space<any>>
    %c19_i32_78 = arith.constant 19 : i32
    %c0_i32_79 = arith.constant 0 : i32
    %138 = tpu.memref_slice %arg3[%c19_i32_78, %c0_i32_79] : memref<96x32xf32, #tpu.memory_space<vmem>> -> memref<1x32xf32, #tpu.memory_space<vmem>>
    %139 = tpu.memref_slice %arg4[%c19_i32_76] : memref<32x!tpu.dma_semaphore, #tpu.memory_space<semaphore_mem>> -> memref<1x!tpu.dma_semaphore, #tpu.memory_space<semaphore_mem>>
    %140 = tpu.memref_squeeze %139 : memref<1x!tpu.dma_semaphore, #tpu.memory_space<semaphore_mem>> -> memref<!tpu.dma_semaphore, #tpu.memory_space<semaphore_mem>>
    tpu.enqueue_dma source(%137 : memref<1x32xf32, #tpu.memory_space<any>>) target(%138 : memref<1x32xf32, #tpu.memory_space<vmem>>) target_semaphore(%140 : memref<!tpu.dma_semaphore, #tpu.memory_space<semaphore_mem>>)
    %c20_i32 = arith.constant 20 : i32
    %141 = arith.addi %0, %c20_i32 : i32
    %142 = arith.index_cast %141 : i32 to index
    %143 = memref.load %arg1[%142] : memref<192xi32, #tpu.memory_space<smem>>
    %c20_i32_80 = arith.constant 20 : i32
    %c0_i32_81 = arith.constant 0 : i32
    %144 = tpu.memref_slice %arg2[%143, %c0_i32_81] : memref<100000x32xf32, #tpu.memory_space<any>> -> memref<1x32xf32, #tpu.memory_space<any>>
    %c20_i32_82 = arith.constant 20 : i32
    %c0_i32_83 = arith.constant 0 : i32
    %145 = tpu.memref_slice %arg3[%c20_i32_82, %c0_i32_83] : memref<96x32xf32, #tpu.memory_space<vmem>> -> memref<1x32xf32, #tpu.memory_space<vmem>>
    %146 = tpu.memref_slice %arg4[%c20_i32_80] : memref<32x!tpu.dma_semaphore, #tpu.memory_space<semaphore_mem>> -> memref<1x!tpu.dma_semaphore, #tpu.memory_space<semaphore_mem>>
    %147 = tpu.memref_squeeze %146 : memref<1x!tpu.dma_semaphore, #tpu.memory_space<semaphore_mem>> -> memref<!tpu.dma_semaphore, #tpu.memory_space<semaphore_mem>>
    tpu.enqueue_dma source(%144 : memref<1x32xf32, #tpu.memory_space<any>>) target(%145 : memref<1x32xf32, #tpu.memory_space<vmem>>) target_semaphore(%147 : memref<!tpu.dma_semaphore, #tpu.memory_space<semaphore_mem>>)
    %c21_i32 = arith.constant 21 : i32
    %148 = arith.addi %0, %c21_i32 : i32
    %149 = arith.index_cast %148 : i32 to index
    %150 = memref.load %arg1[%149] : memref<192xi32, #tpu.memory_space<smem>>
    %c21_i32_84 = arith.constant 21 : i32
    %c0_i32_85 = arith.constant 0 : i32
    %151 = tpu.memref_slice %arg2[%150, %c0_i32_85] : memref<100000x32xf32, #tpu.memory_space<any>> -> memref<1x32xf32, #tpu.memory_space<any>>
    %c21_i32_86 = arith.constant 21 : i32
    %c0_i32_87 = arith.constant 0 : i32
    %152 = tpu.memref_slice %arg3[%c21_i32_86, %c0_i32_87] : memref<96x32xf32, #tpu.memory_space<vmem>> -> memref<1x32xf32, #tpu.memory_space<vmem>>
    %153 = tpu.memref_slice %arg4[%c21_i32_84] : memref<32x!tpu.dma_semaphore, #tpu.memory_space<semaphore_mem>> -> memref<1x!tpu.dma_semaphore, #tpu.memory_space<semaphore_mem>>
    %154 = tpu.memref_squeeze %153 : memref<1x!tpu.dma_semaphore, #tpu.memory_space<semaphore_mem>> -> memref<!tpu.dma_semaphore, #tpu.memory_space<semaphore_mem>>
    tpu.enqueue_dma source(%151 : memref<1x32xf32, #tpu.memory_space<any>>) target(%152 : memref<1x32xf32, #tpu.memory_space<vmem>>) target_semaphore(%154 : memref<!tpu.dma_semaphore, #tpu.memory_space<semaphore_mem>>)
    %c22_i32 = arith.constant 22 : i32
    %155 = arith.addi %0, %c22_i32 : i32
    %156 = arith.index_cast %155 : i32 to index
    %157 = memref.load %arg1[%156] : memref<192xi32, #tpu.memory_space<smem>>
    %c22_i32_88 = arith.constant 22 : i32
    %c0_i32_89 = arith.constant 0 : i32
    %158 = tpu.memref_slice %arg2[%157, %c0_i32_89] : memref<100000x32xf32, #tpu.memory_space<any>> -> memref<1x32xf32, #tpu.memory_space<any>>
    %c22_i32_90 = arith.constant 22 : i32
    %c0_i32_91 = arith.constant 0 : i32
    %159 = tpu.memref_slice %arg3[%c22_i32_90, %c0_i32_91] : memref<96x32xf32, #tpu.memory_space<vmem>> -> memref<1x32xf32, #tpu.memory_space<vmem>>
    %160 = tpu.memref_slice %arg4[%c22_i32_88] : memref<32x!tpu.dma_semaphore, #tpu.memory_space<semaphore_mem>> -> memref<1x!tpu.dma_semaphore, #tpu.memory_space<semaphore_mem>>
    %161 = tpu.memref_squeeze %160 : memref<1x!tpu.dma_semaphore, #tpu.memory_space<semaphore_mem>> -> memref<!tpu.dma_semaphore, #tpu.memory_space<semaphore_mem>>
    tpu.enqueue_dma source(%158 : memref<1x32xf32, #tpu.memory_space<any>>) target(%159 : memref<1x32xf32, #tpu.memory_space<vmem>>) target_semaphore(%161 : memref<!tpu.dma_semaphore, #tpu.memory_space<semaphore_mem>>)
    %c23_i32 = arith.constant 23 : i32
    %162 = arith.addi %0, %c23_i32 : i32
    %163 = arith.index_cast %162 : i32 to index
    %164 = memref.load %arg1[%163] : memref<192xi32, #tpu.memory_space<smem>>
    %c23_i32_92 = arith.constant 23 : i32
    %c0_i32_93 = arith.constant 0 : i32
    %165 = tpu.memref_slice %arg2[%164, %c0_i32_93] : memref<100000x32xf32, #tpu.memory_space<any>> -> memref<1x32xf32, #tpu.memory_space<any>>
    %c23_i32_94 = arith.constant 23 : i32
    %c0_i32_95 = arith.constant 0 : i32
    %166 = tpu.memref_slice %arg3[%c23_i32_94, %c0_i32_95] : memref<96x32xf32, #tpu.memory_space<vmem>> -> memref<1x32xf32, #tpu.memory_space<vmem>>
    %167 = tpu.memref_slice %arg4[%c23_i32_92] : memref<32x!tpu.dma_semaphore, #tpu.memory_space<semaphore_mem>> -> memref<1x!tpu.dma_semaphore, #tpu.memory_space<semaphore_mem>>
    %168 = tpu.memref_squeeze %167 : memref<1x!tpu.dma_semaphore, #tpu.memory_space<semaphore_mem>> -> memref<!tpu.dma_semaphore, #tpu.memory_space<semaphore_mem>>
    tpu.enqueue_dma source(%165 : memref<1x32xf32, #tpu.memory_space<any>>) target(%166 : memref<1x32xf32, #tpu.memory_space<vmem>>) target_semaphore(%168 : memref<!tpu.dma_semaphore, #tpu.memory_space<semaphore_mem>>)
    %c24_i32 = arith.constant 24 : i32
    %169 = arith.addi %0, %c24_i32 : i32
    %170 = arith.index_cast %169 : i32 to index
    %171 = memref.load %arg1[%170] : memref<192xi32, #tpu.memory_space<smem>>
    %c24_i32_96 = arith.constant 24 : i32
    %c0_i32_97 = arith.constant 0 : i32
    %172 = tpu.memref_slice %arg2[%171, %c0_i32_97] : memref<100000x32xf32, #tpu.memory_space<any>> -> memref<1x32xf32, #tpu.memory_space<any>>
    %c24_i32_98 = arith.constant 24 : i32
    %c0_i32_99 = arith.constant 0 : i32
    %173 = tpu.memref_slice %arg3[%c24_i32_98, %c0_i32_99] : memref<96x32xf32, #tpu.memory_space<vmem>> -> memref<1x32xf32, #tpu.memory_space<vmem>>
    %174 = tpu.memref_slice %arg4[%c24_i32_96] : memref<32x!tpu.dma_semaphore, #tpu.memory_space<semaphore_mem>> -> memref<1x!tpu.dma_semaphore, #tpu.memory_space<semaphore_mem>>
    %175 = tpu.memref_squeeze %174 : memref<1x!tpu.dma_semaphore, #tpu.memory_space<semaphore_mem>> -> memref<!tpu.dma_semaphore, #tpu.memory_space<semaphore_mem>>
    tpu.enqueue_dma source(%172 : memref<1x32xf32, #tpu.memory_space<any>>) target(%173 : memref<1x32xf32, #tpu.memory_space<vmem>>) target_semaphore(%175 : memref<!tpu.dma_semaphore, #tpu.memory_space<semaphore_mem>>)
    %c25_i32 = arith.constant 25 : i32
    %176 = arith.addi %0, %c25_i32 : i32
    %177 = arith.index_cast %176 : i32 to index
    %178 = memref.load %arg1[%177] : memref<192xi32, #tpu.memory_space<smem>>
    %c25_i32_100 = arith.constant 25 : i32
    %c0_i32_101 = arith.constant 0 : i32
    %179 = tpu.memref_slice %arg2[%178, %c0_i32_101] : memref<100000x32xf32, #tpu.memory_space<any>> -> memref<1x32xf32, #tpu.memory_space<any>>
    %c25_i32_102 = arith.constant 25 : i32
    %c0_i32_103 = arith.constant 0 : i32
    %180 = tpu.memref_slice %arg3[%c25_i32_102, %c0_i32_103] : memref<96x32xf32, #tpu.memory_space<vmem>> -> memref<1x32xf32, #tpu.memory_space<vmem>>
    %181 = tpu.memref_slice %arg4[%c25_i32_100] : memref<32x!tpu.dma_semaphore, #tpu.memory_space<semaphore_mem>> -> memref<1x!tpu.dma_semaphore, #tpu.memory_space<semaphore_mem>>
    %182 = tpu.memref_squeeze %181 : memref<1x!tpu.dma_semaphore, #tpu.memory_space<semaphore_mem>> -> memref<!tpu.dma_semaphore, #tpu.memory_space<semaphore_mem>>
    tpu.enqueue_dma source(%179 : memref<1x32xf32, #tpu.memory_space<any>>) target(%180 : memref<1x32xf32, #tpu.memory_space<vmem>>) target_semaphore(%182 : memref<!tpu.dma_semaphore, #tpu.memory_space<semaphore_mem>>)
    %c26_i32 = arith.constant 26 : i32
    %183 = arith.addi %0, %c26_i32 : i32
    %184 = arith.index_cast %183 : i32 to index
    %185 = memref.load %arg1[%184] : memref<192xi32, #tpu.memory_space<smem>>
    %c26_i32_104 = arith.constant 26 : i32
    %c0_i32_105 = arith.constant 0 : i32
    %186 = tpu.memref_slice %arg2[%185, %c0_i32_105] : memref<100000x32xf32, #tpu.memory_space<any>> -> memref<1x32xf32, #tpu.memory_space<any>>
    %c26_i32_106 = arith.constant 26 : i32
    %c0_i32_107 = arith.constant 0 : i32
    %187 = tpu.memref_slice %arg3[%c26_i32_106, %c0_i32_107] : memref<96x32xf32, #tpu.memory_space<vmem>> -> memref<1x32xf32, #tpu.memory_space<vmem>>
    %188 = tpu.memref_slice %arg4[%c26_i32_104] : memref<32x!tpu.dma_semaphore, #tpu.memory_space<semaphore_mem>> -> memref<1x!tpu.dma_semaphore, #tpu.memory_space<semaphore_mem>>
    %189 = tpu.memref_squeeze %188 : memref<1x!tpu.dma_semaphore, #tpu.memory_space<semaphore_mem>> -> memref<!tpu.dma_semaphore, #tpu.memory_space<semaphore_mem>>
    tpu.enqueue_dma source(%186 : memref<1x32xf32, #tpu.memory_space<any>>) target(%187 : memref<1x32xf32, #tpu.memory_space<vmem>>) target_semaphore(%189 : memref<!tpu.dma_semaphore, #tpu.memory_space<semaphore_mem>>)
    %c27_i32 = arith.constant 27 : i32
    %190 = arith.addi %0, %c27_i32 : i32
    %191 = arith.index_cast %190 : i32 to index
    %192 = memref.load %arg1[%191] : memref<192xi32, #tpu.memory_space<smem>>
    %c27_i32_108 = arith.constant 27 : i32
    %c0_i32_109 = arith.constant 0 : i32
    %193 = tpu.memref_slice %arg2[%192, %c0_i32_109] : memref<100000x32xf32, #tpu.memory_space<any>> -> memref<1x32xf32, #tpu.memory_space<any>>
    %c27_i32_110 = arith.constant 27 : i32
    %c0_i32_111 = arith.constant 0 : i32
    %194 = tpu.memref_slice %arg3[%c27_i32_110, %c0_i32_111] : memref<96x32xf32, #tpu.memory_space<vmem>> -> memref<1x32xf32, #tpu.memory_space<vmem>>
    %195 = tpu.memref_slice %arg4[%c27_i32_108] : memref<32x!tpu.dma_semaphore, #tpu.memory_space<semaphore_mem>> -> memref<1x!tpu.dma_semaphore, #tpu.memory_space<semaphore_mem>>
    %196 = tpu.memref_squeeze %195 : memref<1x!tpu.dma_semaphore, #tpu.memory_space<semaphore_mem>> -> memref<!tpu.dma_semaphore, #tpu.memory_space<semaphore_mem>>
    tpu.enqueue_dma source(%193 : memref<1x32xf32, #tpu.memory_space<any>>) target(%194 : memref<1x32xf32, #tpu.memory_space<vmem>>) target_semaphore(%196 : memref<!tpu.dma_semaphore, #tpu.memory_space<semaphore_mem>>)
    %c28_i32 = arith.constant 28 : i32
    %197 = arith.addi %0, %c28_i32 : i32
    %198 = arith.index_cast %197 : i32 to index
    %199 = memref.load %arg1[%198] : memref<192xi32, #tpu.memory_space<smem>>
    %c28_i32_112 = arith.constant 28 : i32
    %c0_i32_113 = arith.constant 0 : i32
    %200 = tpu.memref_slice %arg2[%199, %c0_i32_113] : memref<100000x32xf32, #tpu.memory_space<any>> -> memref<1x32xf32, #tpu.memory_space<any>>
    %c28_i32_114 = arith.constant 28 : i32
    %c0_i32_115 = arith.constant 0 : i32
    %201 = tpu.memref_slice %arg3[%c28_i32_114, %c0_i32_115] : memref<96x32xf32, #tpu.memory_space<vmem>> -> memref<1x32xf32, #tpu.memory_space<vmem>>
    %202 = tpu.memref_slice %arg4[%c28_i32_112] : memref<32x!tpu.dma_semaphore, #tpu.memory_space<semaphore_mem>> -> memref<1x!tpu.dma_semaphore, #tpu.memory_space<semaphore_mem>>
    %203 = tpu.memref_squeeze %202 : memref<1x!tpu.dma_semaphore, #tpu.memory_space<semaphore_mem>> -> memref<!tpu.dma_semaphore, #tpu.memory_space<semaphore_mem>>
    tpu.enqueue_dma source(%200 : memref<1x32xf32, #tpu.memory_space<any>>) target(%201 : memref<1x32xf32, #tpu.memory_space<vmem>>) target_semaphore(%203 : memref<!tpu.dma_semaphore, #tpu.memory_space<semaphore_mem>>)
    %c29_i32 = arith.constant 29 : i32
    %204 = arith.addi %0, %c29_i32 : i32
    %205 = arith.index_cast %204 : i32 to index
    %206 = memref.load %arg1[%205] : memref<192xi32, #tpu.memory_space<smem>>
    %c29_i32_116 = arith.constant 29 : i32
    %c0_i32_117 = arith.constant 0 : i32
    %207 = tpu.memref_slice %arg2[%206, %c0_i32_117] : memref<100000x32xf32, #tpu.memory_space<any>> -> memref<1x32xf32, #tpu.memory_space<any>>
    %c29_i32_118 = arith.constant 29 : i32
    %c0_i32_119 = arith.constant 0 : i32
    %208 = tpu.memref_slice %arg3[%c29_i32_118, %c0_i32_119] : memref<96x32xf32, #tpu.memory_space<vmem>> -> memref<1x32xf32, #tpu.memory_space<vmem>>
    %209 = tpu.memref_slice %arg4[%c29_i32_116] : memref<32x!tpu.dma_semaphore, #tpu.memory_space<semaphore_mem>> -> memref<1x!tpu.dma_semaphore, #tpu.memory_space<semaphore_mem>>
    %210 = tpu.memref_squeeze %209 : memref<1x!tpu.dma_semaphore, #tpu.memory_space<semaphore_mem>> -> memref<!tpu.dma_semaphore, #tpu.memory_space<semaphore_mem>>
    tpu.enqueue_dma source(%207 : memref<1x32xf32, #tpu.memory_space<any>>) target(%208 : memref<1x32xf32, #tpu.memory_space<vmem>>) target_semaphore(%210 : memref<!tpu.dma_semaphore, #tpu.memory_space<semaphore_mem>>)
    %c30_i32 = arith.constant 30 : i32
    %211 = arith.addi %0, %c30_i32 : i32
    %212 = arith.index_cast %211 : i32 to index
    %213 = memref.load %arg1[%212] : memref<192xi32, #tpu.memory_space<smem>>
    %c30_i32_120 = arith.constant 30 : i32
    %c0_i32_121 = arith.constant 0 : i32
    %214 = tpu.memref_slice %arg2[%213, %c0_i32_121] : memref<100000x32xf32, #tpu.memory_space<any>> -> memref<1x32xf32, #tpu.memory_space<any>>
    %c30_i32_122 = arith.constant 30 : i32
    %c0_i32_123 = arith.constant 0 : i32
    %215 = tpu.memref_slice %arg3[%c30_i32_122, %c0_i32_123] : memref<96x32xf32, #tpu.memory_space<vmem>> -> memref<1x32xf32, #tpu.memory_space<vmem>>
    %216 = tpu.memref_slice %arg4[%c30_i32_120] : memref<32x!tpu.dma_semaphore, #tpu.memory_space<semaphore_mem>> -> memref<1x!tpu.dma_semaphore, #tpu.memory_space<semaphore_mem>>
    %217 = tpu.memref_squeeze %216 : memref<1x!tpu.dma_semaphore, #tpu.memory_space<semaphore_mem>> -> memref<!tpu.dma_semaphore, #tpu.memory_space<semaphore_mem>>
    tpu.enqueue_dma source(%214 : memref<1x32xf32, #tpu.memory_space<any>>) target(%215 : memref<1x32xf32, #tpu.memory_space<vmem>>) target_semaphore(%217 : memref<!tpu.dma_semaphore, #tpu.memory_space<semaphore_mem>>)
    %c31_i32 = arith.constant 31 : i32
    %218 = arith.addi %0, %c31_i32 : i32
    %219 = arith.index_cast %218 : i32 to index
    %220 = memref.load %arg1[%219] : memref<192xi32, #tpu.memory_space<smem>>
    %c31_i32_124 = arith.constant 31 : i32
    %c0_i32_125 = arith.constant 0 : i32
    %221 = tpu.memref_slice %arg2[%220, %c0_i32_125] : memref<100000x32xf32, #tpu.memory_space<any>> -> memref<1x32xf32, #tpu.memory_space<any>>
    %c31_i32_126 = arith.constant 31 : i32
    %c0_i32_127 = arith.constant 0 : i32
    %222 = tpu.memref_slice %arg3[%c31_i32_126, %c0_i32_127] : memref<96x32xf32, #tpu.memory_space<vmem>> -> memref<1x32xf32, #tpu.memory_space<vmem>>
    %223 = tpu.memref_slice %arg4[%c31_i32_124] : memref<32x!tpu.dma_semaphore, #tpu.memory_space<semaphore_mem>> -> memref<1x!tpu.dma_semaphore, #tpu.memory_space<semaphore_mem>>
    %224 = tpu.memref_squeeze %223 : memref<1x!tpu.dma_semaphore, #tpu.memory_space<semaphore_mem>> -> memref<!tpu.dma_semaphore, #tpu.memory_space<semaphore_mem>>
    tpu.enqueue_dma source(%221 : memref<1x32xf32, #tpu.memory_space<any>>) target(%222 : memref<1x32xf32, #tpu.memory_space<vmem>>) target_semaphore(%224 : memref<!tpu.dma_semaphore, #tpu.memory_space<semaphore_mem>>)
    %c0_i32_128 = arith.constant 0 : i32
    %c96_i32_129 = arith.constant 96 : i32
    %225 = arith.addi %c0_i32_128, %c96_i32_129 : i32
    %c1_i32_130 = arith.constant 1 : i32
    scf.for %arg5 = %c0_i32_128 to %225 step %c1_i32_130  : i32 {
      %c32_i32 = arith.constant 32 : i32
      %c0_i32_132 = arith.constant 0 : i32
      %226 = arith.cmpi eq, %c32_i32, %c0_i32_132 : i32
      %c1_i32_133 = arith.constant 1 : i32
      %227 = arith.select %226, %c1_i32_133, %c32_i32 : i32
      %228 = arith.remsi %arg5, %227 : i32
      %c0_i32_134 = arith.constant 0 : i32
      %229 = arith.cmpi ne, %228, %c0_i32_134 : i32
      %c0_i32_135 = arith.constant 0 : i32
      %230 = arith.cmpi slt, %228, %c0_i32_135 : i32
      %c0_i32_136 = arith.constant 0 : i32
      %231 = arith.cmpi slt, %227, %c0_i32_136 : i32
      %232 = arith.xori %230, %231 : i1
      %233 = arith.andi %232, %229 : i1
      %234 = arith.addi %228, %227 : i32
      %235 = arith.select %233, %234, %228 : i32
      %236 = arith.addi %0, %arg5 : i32
      %237 = arith.index_cast %236 : i32 to index
      %238 = memref.load %arg1[%237] : memref<192xi32, #tpu.memory_space<smem>>
      %c32_i32_137 = arith.constant 32 : i32
      %239 = arith.addi %arg5, %c32_i32_137 : i32
      %c96_i32_138 = arith.constant 96 : i32
      %240 = arith.cmpi slt, %239, %c96_i32_138 : i32
      %c0_i32_139 = arith.constant 0 : i32
      %241 = arith.select %240, %239, %c0_i32_139 : i32
      %242 = arith.addi %0, %241 : i32
      %243 = arith.index_cast %242 : i32 to index
      %244 = memref.load %arg1[%243] : memref<192xi32, #tpu.memory_space<smem>>
      %c0_i32_140 = arith.constant 0 : i32
      %245 = tpu.memref_slice %arg2[%238, %c0_i32_140] : memref<100000x32xf32, #tpu.memory_space<any>> -> memref<1x32xf32, #tpu.memory_space<any>>
      %c0_i32_141 = arith.constant 0 : i32
      %246 = tpu.memref_slice %arg3[%arg5, %c0_i32_141] : memref<96x32xf32, #tpu.memory_space<vmem>> -> memref<1x32xf32, #tpu.memory_space<vmem>>
      %247 = tpu.memref_slice %arg4[%235] : memref<32x!tpu.dma_semaphore, #tpu.memory_space<semaphore_mem>> -> memref<1x!tpu.dma_semaphore, #tpu.memory_space<semaphore_mem>>
      %248 = tpu.memref_squeeze %247 : memref<1x!tpu.dma_semaphore, #tpu.memory_space<semaphore_mem>> -> memref<!tpu.dma_semaphore, #tpu.memory_space<semaphore_mem>>
      tpu.wait_dma2 semaphore(%248 : memref<!tpu.dma_semaphore, #tpu.memory_space<semaphore_mem>>) src(%245 : memref<1x32xf32, #tpu.memory_space<any>>) dst(%246 : memref<1x32xf32, #tpu.memory_space<vmem>>)
      %c96_i32_142 = arith.constant 96 : i32
      %249 = arith.cmpi slt, %239, %c96_i32_142 : i32
      %250 = arith.extui %249 : i1 to i32
      %c0_i32_143 = arith.constant 0 : i32
      %251 = arith.cmpi ne, %250, %c0_i32_143 : i32
      scf.if %251 {
        %c0_i32_144 = arith.constant 0 : i32
        %252 = tpu.memref_slice %arg2[%244, %c0_i32_144] : memref<100000x32xf32, #tpu.memory_space<any>> -> memref<1x32xf32, #tpu.memory_space<any>>
        %c0_i32_145 = arith.constant 0 : i32
        %253 = tpu.memref_slice %arg3[%239, %c0_i32_145] : memref<96x32xf32, #tpu.memory_space<vmem>> -> memref<1x32xf32, #tpu.memory_space<vmem>>
        %254 = tpu.memref_slice %arg4[%235] : memref<32x!tpu.dma_semaphore, #tpu.memory_space<semaphore_mem>> -> memref<1x!tpu.dma_semaphore, #tpu.memory_space<semaphore_mem>>
        %255 = tpu.memref_squeeze %254 : memref<1x!tpu.dma_semaphore, #tpu.memory_space<semaphore_mem>> -> memref<!tpu.dma_semaphore, #tpu.memory_space<semaphore_mem>>
        tpu.enqueue_dma source(%252 : memref<1x32xf32, #tpu.memory_space<any>>) target(%253 : memref<1x32xf32, #tpu.memory_space<vmem>>) target_semaphore(%255 : memref<!tpu.dma_semaphore, #tpu.memory_space<semaphore_mem>>)
      } else {
      }
    }
    %c96_i32_131 = arith.constant 96 : i32
    return
  }
  func.func @transform_1(%arg0: i32, %arg1: memref<192xi32, #tpu.memory_space<smem>>) -> (i32, i32) {
    %c0_i32 = arith.constant 0 : i32
    %c0_i32_0 = arith.constant 0 : i32
    return %arg0, %c0_i32 : i32, i32
  }
}

</mosaic_0001>

<bundles_post_ra>
// kernel: tpu_custom_call.1
= control target key start
LH: loop header
LB: loop body
LE: loop exit
PB: predicated region body
PF: predicated region fallthrough
CT: control target
= control target key end

     0   :  { %s2561_s0 = inlined_call_operand.vmem [shape: s32[192], index: 0, kind: input, shape index: {}]   ;;  %s2562_s1 = inlined_call_operand.hbm [shape: f32[100000,32], index: 1, kind: input, shape index: {}]   ;;  %s2563_s2 = inlined_call_operand.vmem [shape: f32[192,32], index: 2, kind: output, shape index: {}]  }
   0x1   :  { %s7_s11 = sshll.u32 %s2561_s0, 4  ;;  %s8_s11 = int_to_ptr.vmem [resolvable:$true] %s7_s11 }
   0x2   :  { %s1078_s12 = scalar_lea.vmem %s8_s11, 32  ;;  %p1083_p1 = scmp.lt.s32.totalorder %s8_s11, %s8_s11 }
   0x3   :  { %p1079_p0 = scmp.ne.s32.totalorder %s8_s11, %s1078_s12  ;;  %p1084_p2 = scmp.lt.s32.totalorder %s1078_s12, %s1078_s12 }
   0x5   :  { %p1085_p3 = por %p1084_p2, %p1083_p1 }
   0x7   :  { %p1086_p4 = pnand %p1085_p3, %p1079_p0 }
   0x9   :  { %1089 = shalt.err (!%p1086_p4)  }
   0xa   :  { %s1906_s13 = smov [#allocation4]  }
   0xb   :  { %10 = dma.vmem_to_smem %s8_s11, 32, %s1906_s13, [#allocation3] }
   0xc   :  { %1894 = dma.done.wait [#allocation3], 32 }
   0xd   :  { %1895 = vsyncadd [#allocation3], 4294967264 }
   0xe   :  { %12 = sfence }
   0xf   :  { %s1925_s14 = smov 0  }
  0x10 LB: > { %p985_p5 = scmp.ge.s32.totalorder %s1900_s14, 2  ;;  %s1900_s14 = sphi %s1925_s14, %s18_s14  }
  0x11   : > { %s51_s0 = smul.u32 (!%p985_p5), 12, %s1900_s14  ;;  %s1956_s8 = scalar_lea.hbm (!%p985_p5), %s2562_s1, 1600000 }
  0x12   : > { %43 = sbr.rel (%p985_p5) target bundleno = 787 (0x313), region = 12 }
  0x13   : > { %s1933_s15 = smul.u32 (!%p985_p5), 96, %s1900_s14  ;;  %p52_p6 = scmp.lt.s32.totalorder (!%p985_p5), %s51_s0, 23 }
  0x15   : > { %s58_s16 = sld [smem:[#allocation4 + %s1933_s15]] (!%p985_p5)  ;;  %s72_s17 = sadd.s32 (!%p985_p5), 1, %s1933_s15 }
  0x16   : > { %s1937_s18 = sld [smem:[#allocation4 + %s72_s17]] (!%p985_p5)  ;;  %s89_s19 = sadd.s32 (!%p985_p5), 2, %s1933_s15 }
  0x17   : > { %s1940_s21 = sld [smem:[#allocation4 + %s89_s19]] (!%p985_p5)  ;;  %s106_s25 = sadd.s32 (!%p985_p5), 3, %s1933_s15 }
  0x19   : > { %s2566_s0 = smov (!%p52_p6, %s51_s0), 23 }
  0x1a   : > { %s986_s20 = sshll.u32 %s2566_s0, 3 }
  0x1b   : > { %s1945_s24 = scalar_lea.vmem %s2563_s2, %s986_s20  ;;  %s987_s28 = sshll.u32 %s58_s16, 4 }
  0x1c   : > { %s68_s26 = sshll.u32 %s1945_s24, 4  ;;  %s76_s27 = scalar_lea.vmem %s1945_s24, 1  ;;  %s69_s26 = int_to_ptr.vmem [resolvable:$true] %s68_s26 }
  0x1d   : > { %s60_s3 = scalar_lea.hbm %s2562_s1, %s987_s28  ;;  %s85_s4 = sshll.u32 %s76_s27, 4  ;;  %s86_s4 = int_to_ptr.vmem [resolvable:$true] %s85_s4 }
  0x1e   : > { %s1090_s5 = scalar_lea.hbm %s60_s3, 16  ;;  %p1093_p8 = scmp.lt.u32.totalorder %s60_s3, %s2562_s1 }
  0x1f   : > { %p1091_p7 = scmp.ne.s32.totalorder %s60_s3, %s1090_s5  ;;  %p1094_p9 = scmp.lt.u32.totalorder %s1956_s8, %s1090_s5 }
  0x20   : > { %p1096_p11 = scmp.lt.u32.totalorder %s1090_s5, %s60_s3 }
  0x21   : > { %p1095_p10 = por %p1094_p9, %p1093_p8 }
  0x23   : > { %p1097_p12 = por %p1096_p11, %p1095_p10 }
  0x25   : > { %p1098_p13 = pnand %p1097_p12, %p1091_p7 }
  0x27   : > { %1101 = shalt.err (!%p1098_p13)  }
  0x28   : > { %s1102_s11 = scalar_lea.vmem %s69_s26, 16  ;;  %s1104_s0 = sshll.u32 %s2563_s2, 4  ;;  %s1965_s0 = int_to_ptr.vmem [resolvable:$false] %s1104_s0 }
  0x29   : > { %p1103_p0 = scmp.ne.s32.totalorder %s69_s26, %s1102_s11  ;;  %s1968_s16 = scalar_lea.vmem %s1965_s0, 3072 }
  0x2a   : > { %p1107_p1 = scmp.lt.s32.totalorder %s69_s26, %s1965_s0  ;;  %p1108_p2 = scmp.lt.s32.totalorder %s1968_s16, %s1102_s11 }
  0x2c   : > { %p1109_p3 = por %p1108_p2, %p1107_p1 }
  0x2e   : > { %p1110_p4 = pnand %p1109_p3, %p1103_p0 }
  0x30   : > { %1113 = shalt.err (!%p1110_p4)  }
  0x31   : > { %71 = dma.hbm_to_vmem [thread:$0]  %s60_s3, 16, %s69_s26, [#allocation2] }
  0x32   : > { %s988_s17 = sshll.u32 %s1937_s18, 4  ;;  %s989_s23 = sshll.u32 %s1940_s21, 4 }
  0x33   : > { %s75_s22 = scalar_lea.hbm %s2562_s1, %s988_s17 }
  0x34   : > { %s1114_s27 = scalar_lea.hbm %s75_s22, 16  ;;  %p1117_p6 = scmp.lt.u32.totalorder %s75_s22, %s2562_s1 }
  0x35   : > { %p1115_p5 = scmp.ne.s32.totalorder %s75_s22, %s1114_s27  ;;  %p1118_p7 = scmp.lt.u32.totalorder %s1956_s8, %s1114_s27 }
  0x36   : > { %p1120_p9 = scmp.lt.u32.totalorder %s1114_s27, %s75_s22 }
  0x37   : > { %p1119_p8 = por %p1118_p7, %p1117_p6 }
  0x39   : > { %p1121_p10 = por %p1120_p9, %p1119_p8 }
  0x3b   : > { %p1122_p11 = pnand %p1121_p10, %p1115_p5 }
  0x3d   : > { %1125 = shalt.err (!%p1122_p11)  }
  0x3e   : > { %s1126_s26 = scalar_lea.vmem %s86_s4, 16  ;;  %p1131_p13 = scmp.lt.s32.totalorder %s86_s4, %s1965_s0 }
  0x3f   : > { %p1127_p12 = scmp.ne.s32.totalorder %s86_s4, %s1126_s26  ;;  %p1132_p0 = scmp.lt.s32.totalorder %s1968_s16, %s1126_s26 }
  0x41   : > { %p1133_p1 = por %p1132_p0, %p1131_p13 }
  0x43   : > { %p1134_p2 = pnand %p1133_p1, %p1127_p12 }
  0x45   : > { %1137 = shalt.err (!%p1134_p2)  }
  0x46   : > { %88 = dma.hbm_to_vmem [thread:$0]  %s75_s22, 16, %s86_s4, [#allocation2 + $0x1] }
  0x47   : > { %s92_s30 = scalar_lea.hbm %s2562_s1, %s989_s23  ;;  %s93_s3 = scalar_lea.vmem %s1945_s24, 2 }
  0x48   : > { %s102_s5 = sshll.u32 %s93_s3, 4  ;;  %s1989_s6 = sld [smem:[#allocation4 + %s106_s25]]  ;;  %s103_s5 = int_to_ptr.vmem [resolvable:$true] %s102_s5 }
  0x49   : > { %s110_s7 = scalar_lea.vmem %s1945_s24, 3  ;;  %s1138_s9 = scalar_lea.hbm %s92_s30, 16 }
  0x4a   : > { %p1139_p3 = scmp.ne.s32.totalorder %s92_s30, %s1138_s9  ;;  %p1141_p4 = scmp.lt.u32.totalorder %s92_s30, %s2562_s1 }
  0x4b   : > { %p1142_p5 = scmp.lt.u32.totalorder %s1956_s8, %s1138_s9  ;;  %p1144_p7 = scmp.lt.u32.totalorder %s1138_s9, %s92_s30 }
  0x4d   : > { %p1143_p6 = por %p1142_p5, %p1141_p4 }
  0x4f   : > { %p1145_p8 = por %p1144_p7, %p1143_p6 }
  0x51   : > { %p1146_p9 = pnand %p1145_p8, %p1139_p3 }
  0x53   : > { %1149 = shalt.err (!%p1146_p9)  }
  0x54   : > { %s1150_s4 = scalar_lea.vmem %s103_s5, 16  ;;  %p1155_p11 = scmp.lt.s32.totalorder %s103_s5, %s1965_s0 }
  0x55   : > { %p1151_p10 = scmp.ne.s32.totalorder %s103_s5, %s1150_s4  ;;  %p1156_p12 = scmp.lt.s32.totalorder %s1968_s16, %s1150_s4 }
  0x57   : > { %p1157_p13 = por %p1156_p12, %p1155_p11 }
  0x59   : > { %p1158_p0 = pnand %p1157_p13, %p1151_p10 }
  0x5b   : > { %1161 = shalt.err (!%p1158_p0)  }
  0x5c   : > { %105 = dma.hbm_to_vmem [thread:$0]  %s92_s30, 16, %s103_s5, [#allocation2 + $0x2] }
  0x5d   : > { %s119_s25 = sshll.u32 %s110_s7, 4  ;;  %s123_s12 = sadd.s32 4, %s1933_s15  ;;  %s120_s25 = int_to_ptr.vmem [resolvable:$true] %s119_s25 }
  0x5e   : > { %s1999_s13 = sld [smem:[#allocation4 + %s123_s12]]  ;;  %s127_s17 = scalar_lea.vmem %s1945_s24, 4 }
  0x5f   : > { %s140_s19 = sadd.s32 5, %s1933_s15  ;;  %s990_s20 = sshll.u32 %s1989_s6, 4 }
  0x60   : > { %s136_s22 = sshll.u32 %s127_s17, 4  ;;  %s109_s28 = scalar_lea.hbm %s2562_s1, %s990_s20  ;;  %s2007_s22 = int_to_ptr.vmem [resolvable:$true] %s136_s22 }
  0x61   : > { %s1162_s29 = scalar_lea.hbm %s109_s28, 16  ;;  %p1165_p2 = scmp.lt.u32.totalorder %s109_s28, %s2562_s1 }
  0x62   : > { %p1163_p1 = scmp.ne.s32.totalorder %s109_s28, %s1162_s29  ;;  %p1166_p3 = scmp.lt.u32.totalorder %s1956_s8, %s1162_s29 }
  0x63   : > { %p1168_p5 = scmp.lt.u32.totalorder %s1162_s29, %s109_s28 }
  0x64   : > { %p1167_p4 = por %p1166_p3, %p1165_p2 }
  0x66   : > { %p1169_p6 = por %p1168_p5, %p1167_p4 }
  0x68   : > { %p1170_p7 = pnand %p1169_p6, %p1163_p1 }
  0x6a   : > { %1173 = shalt.err (!%p1170_p7)  }
  0x6b   : > { %s1174_s21 = scalar_lea.vmem %s120_s25, 16  ;;  %p1179_p9 = scmp.lt.s32.totalorder %s120_s25, %s1965_s0 }
  0x6c   : > { %p1175_p8 = scmp.ne.s32.totalorder %s120_s25, %s1174_s21  ;;  %p1180_p10 = scmp.lt.s32.totalorder %s1968_s16, %s1174_s21 }
  0x6e   : > { %p1181_p11 = por %p1180_p10, %p1179_p9 }
  0x70   : > { %p1182_p12 = pnand %p1181_p11, %p1175_p8 }
  0x72   : > { %1185 = shalt.err (!%p1182_p12)  }
  0x73   : > { %122 = dma.hbm_to_vmem [thread:$0]  %s109_s28, 16, %s120_s25, [#allocation2 + $0x3] }
  0x74   : > { %s2015_s30 = sld [smem:[#allocation4 + %s140_s19]]  ;;  %s144_s3 = scalar_lea.vmem %s1945_s24, 5 }
  0x75   : > { %s991_s5 = sshll.u32 %s1999_s13, 4  ;;  %s153_s6 = sshll.u32 %s144_s3, 4  ;;  %s2022_s6 = int_to_ptr.vmem [resolvable:$true] %s153_s6 }
  0x76   : > { %s126_s10 = scalar_lea.hbm %s2562_s1, %s991_s5 }
  0x77   : > { %s1186_s11 = scalar_lea.hbm %s126_s10, 16  ;;  %p1189_p0 = scmp.lt.u32.totalorder %s126_s10, %s2562_s1 }
  0x78   : > { %p1187_p13 = scmp.ne.s32.totalorder %s126_s10, %s1186_s11  ;;  %p1190_p1 = scmp.lt.u32.totalorder %s1956_s8, %s1186_s11 }
  0x79   : > { %p1192_p3 = scmp.lt.u32.totalorder %s1186_s11, %s126_s10 }
  0x7a   : > { %p1191_p2 = por %p1190_p1, %p1189_p0 }
  0x7c   : > { %p1193_p4 = por %p1192_p3, %p1191_p2 }
  0x7e   : > { %p1194_p5 = pnand %p1193_p4, %p1187_p13 }
  0x80   : > { %1197 = shalt.err (!%p1194_p5)  }
  0x81   : > { %s1198_s25 = scalar_lea.vmem %s2007_s22, 16  ;;  %p1203_p7 = scmp.lt.s32.totalorder %s2007_s22, %s1965_s0 }
  0x82   : > { %p1199_p6 = scmp.ne.s32.totalorder %s2007_s22, %s1198_s25  ;;  %p1204_p8 = scmp.lt.s32.totalorder %s1968_s16, %s1198_s25 }
  0x84   : > { %p1205_p9 = por %p1204_p8, %p1203_p7 }
  0x86   : > { %p1206_p10 = pnand %p1205_p9, %p1199_p6 }
  0x88   : > { %1209 = shalt.err (!%p1206_p10)  }
  0x89   : > { %139 = dma.hbm_to_vmem [thread:$0]  %s126_s10, 16, %s2007_s22, [#allocation2 + $0x4] }
  0x8a   : > { %s157_s13 = sadd.s32 6, %s1933_s15  ;;  %s161_s17 = scalar_lea.vmem %s1945_s24, 6 }
  0x8b   : > { %s2036_s19 = sld [smem:[#allocation4 + %s157_s13]]  ;;  %s170_s20 = sshll.u32 %s161_s17, 4  ;;  %s2039_s20 = int_to_ptr.vmem [resolvable:$true] %s170_s20 }
  0x8c   : > { %s992_s23 = sshll.u32 %s2015_s30, 4  ;;  %s174_s26 = sadd.s32 7, %s1933_s15 }
  0x8d   : > { %s143_s29 = scalar_lea.hbm %s2562_s1, %s992_s23 }
  0x8e   : > { %s1210_s18 = scalar_lea.hbm %s143_s29, 16  ;;  %p1213_p12 = scmp.lt.u32.totalorder %s143_s29, %s2562_s1 }
  0x8f   : > { %p1211_p11 = scmp.ne.s32.totalorder %s143_s29, %s1210_s18  ;;  %p1214_p13 = scmp.lt.u32.totalorder %s1956_s8, %s1210_s18 }
  0x90   : > { %p1216_p1 = scmp.lt.u32.totalorder %s1210_s18, %s143_s29 }
  0x91   : > { %p1215_p0 = por %p1214_p13, %p1213_p12 }
  0x93   : > { %p1217_p2 = por %p1216_p1, %p1215_p0 }
  0x95   : > { %p1218_p3 = pnand %p1217_p2, %p1211_p11 }
  0x97   : > { %1221 = shalt.err (!%p1218_p3)  }
  0x98   : > { %s1222_s22 = scalar_lea.vmem %s2022_s6, 16  ;;  %p1227_p5 = scmp.lt.s32.totalorder %s2022_s6, %s1965_s0 }
  0x99   : > { %p1223_p4 = scmp.ne.s32.totalorder %s2022_s6, %s1222_s22  ;;  %p1228_p6 = scmp.lt.s32.totalorder %s1968_s16, %s1222_s22 }
  0x9b   : > { %p1229_p7 = por %p1228_p6, %p1227_p5 }
  0x9d   : > { %p1230_p8 = pnand %p1229_p7, %p1223_p4 }
  0x9f   : > { %1233 = shalt.err (!%p1230_p8)  }
  0xa0   : > { %156 = dma.hbm_to_vmem [thread:$0]  %s143_s29, 16, %s2022_s6, [#allocation2 + $0x5] }
  0xa1   : > { %s2055_s30 = sld [smem:[#allocation4 + %s174_s26]]  ;;  %s178_s5 = scalar_lea.vmem %s1945_s24, 7 }
  0xa2   : > { %s187_s7 = sshll.u32 %s178_s5, 4  ;;  %s191_s9 = sadd.s32 8, %s1933_s15  ;;  %s2060_s7 = int_to_ptr.vmem [resolvable:$true] %s187_s7 }
  0xa3   : > { %s993_s10 = sshll.u32 %s2036_s19, 4  ;;  %s2065_s25 = sld [smem:[#allocation4 + %s191_s9]] }
  0xa4   : > { %s160_s12 = scalar_lea.hbm %s2562_s1, %s993_s10 }
  0xa5   : > { %s1234_s13 = scalar_lea.hbm %s160_s12, 16  ;;  %p1237_p10 = scmp.lt.u32.totalorder %s160_s12, %s2562_s1 }
  0xa6   : > { %p1235_p9 = scmp.ne.s32.totalorder %s160_s12, %s1234_s13  ;;  %p1238_p11 = scmp.lt.u32.totalorder %s1956_s8, %s1234_s13 }
  0xa7   : > { %p1240_p13 = scmp.lt.u32.totalorder %s1234_s13, %s160_s12 }
  0xa8   : > { %p1239_p12 = por %p1238_p11, %p1237_p10 }
  0xaa   : > { %p1241_p0 = por %p1240_p13, %p1239_p12 }
  0xac   : > { %p1242_p1 = pnand %p1241_p0, %p1235_p9 }
  0xae   : > { %1245 = shalt.err (!%p1242_p1)  }
  0xaf   : > { %s1246_s6 = scalar_lea.vmem %s2039_s20, 16  ;;  %p1251_p3 = scmp.lt.s32.totalorder %s2039_s20, %s1965_s0 }
  0xb0   : > { %p1247_p2 = scmp.ne.s32.totalorder %s2039_s20, %s1246_s6  ;;  %p1252_p4 = scmp.lt.s32.totalorder %s1968_s16, %s1246_s6 }
  0xb2   : > { %p1253_p5 = por %p1252_p4, %p1251_p3 }
  0xb4   : > { %p1254_p6 = pnand %p1253_p5, %p1247_p2 }
  0xb6   : > { %1257 = shalt.err (!%p1254_p6)  }
  0xb7   : > { %173 = dma.hbm_to_vmem [thread:$0]  %s160_s12, 16, %s2039_s20, [#allocation2 + $0x6] }
  0xb8   : > { %s195_s19 = scalar_lea.vmem %s1945_s24, 8  ;;  %s208_s27 = sadd.s32 9, %s1933_s15 }
  0xb9   : > { %s994_s28 = sshll.u32 %s2055_s30, 4  ;;  %s204_s29 = sshll.u32 %s195_s19, 4  ;;  %s2083_s29 = int_to_ptr.vmem [resolvable:$true] %s204_s29 }
  0xba   : > { %s177_s21 = scalar_lea.hbm %s2562_s1, %s994_s28 }
  0xbb   : > { %s1258_s3 = scalar_lea.hbm %s177_s21, 16  ;;  %p1261_p8 = scmp.lt.u32.totalorder %s177_s21, %s2562_s1 }
  0xbc   : > { %p1259_p7 = scmp.ne.s32.totalorder %s177_s21, %s1258_s3  ;;  %p1262_p9 = scmp.lt.u32.totalorder %s1956_s8, %s1258_s3 }
  0xbd   : > { %p1264_p11 = scmp.lt.u32.totalorder %s1258_s3, %s177_s21 }
  0xbe   : > { %p1263_p10 = por %p1262_p9, %p1261_p8 }
  0xc0   : > { %p1265_p12 = por %p1264_p11, %p1263_p10 }
  0xc2   : > { %p1266_p13 = pnand %p1265_p12, %p1259_p7 }
  0xc4   : > { %1269 = shalt.err (!%p1266_p13)  }
  0xc5   : > { %s1270_s20 = scalar_lea.vmem %s2060_s7, 16  ;;  %p1275_p1 = scmp.lt.s32.totalorder %s2060_s7, %s1965_s0 }
  0xc6   : > { %p1271_p0 = scmp.ne.s32.totalorder %s2060_s7, %s1270_s20  ;;  %p1276_p2 = scmp.lt.s32.totalorder %s1968_s16, %s1270_s20 }
  0xc8   : > { %p1277_p3 = por %p1276_p2, %p1275_p1 }
  0xca   : > { %p1278_p4 = pnand %p1277_p3, %p1271_p0 }
  0xcc   : > { %1281 = shalt.err (!%p1278_p4)  }
  0xcd   : > { %190 = dma.hbm_to_vmem [thread:$0]  %s177_s21, 16, %s2060_s7, [#allocation2 + $0x7] }
  0xce   : > { %s995_s30 = sshll.u32 %s2065_s25, 4  ;;  %s2096_s9 = sld [smem:[#allocation4 + %s208_s27]] }
  0xcf   : > { %s194_s4 = scalar_lea.hbm %s2562_s1, %s995_s30  ;;  %s212_s12 = scalar_lea.vmem %s1945_s24, 9 }
  0xd0   : > { %s1282_s13 = scalar_lea.hbm %s194_s4, 16  ;;  %p1285_p6 = scmp.lt.u32.totalorder %s194_s4, %s2562_s1 }
  0xd1   : > { %p1283_p5 = scmp.ne.s32.totalorder %s194_s4, %s1282_s13  ;;  %p1286_p7 = scmp.lt.u32.totalorder %s1956_s8, %s1282_s13 }
  0xd2   : > { %p1288_p9 = scmp.lt.u32.totalorder %s1282_s13, %s194_s4 }
  0xd3   : > { %p1287_p8 = por %p1286_p7, %p1285_p6 }
  0xd5   : > { %p1289_p10 = por %p1288_p9, %p1287_p8 }
  0xd7   : > { %p1290_p11 = pnand %p1289_p10, %p1283_p5 }
  0xd9   : > { %1293 = shalt.err (!%p1290_p11)  }
  0xda   : > { %s1294_s7 = scalar_lea.vmem %s2083_s29, 16  ;;  %p1299_p13 = scmp.lt.s32.totalorder %s2083_s29, %s1965_s0 }
  0xdb   : > { %p1295_p12 = scmp.ne.s32.totalorder %s2083_s29, %s1294_s7  ;;  %p1300_p0 = scmp.lt.s32.totalorder %s1968_s16, %s1294_s7 }
  0xdd   : > { %p1301_p1 = por %p1300_p0, %p1299_p13 }
  0xdf   : > { %p1302_p2 = pnand %p1301_p1, %p1295_p12 }
  0xe1   : > { %1305 = shalt.err (!%p1302_p2)  }
  0xe2   : > { %207 = dma.hbm_to_vmem [thread:$0]  %s194_s4, 16, %s2083_s29, [#allocation2 + $0x8] }
  0xe3   : > { %s221_s25 = sshll.u32 %s212_s12, 4  ;;  %s225_s6 = sadd.s32 10, %s1933_s15  ;;  %s222_s25 = int_to_ptr.vmem [resolvable:$true] %s221_s25 }
  0xe4   : > { %s2113_s19 = sld [smem:[#allocation4 + %s225_s6]]  ;;  %s229_s27 = scalar_lea.vmem %s1945_s24, 10 }
  0xe5   : > { %s242_s28 = sadd.s32 11, %s1933_s15  ;;  %s996_s26 = sshll.u32 %s2096_s9, 4 }
  0xe6   : > { %s238_s18 = sshll.u32 %s229_s27, 4  ;;  %s211_s22 = scalar_lea.hbm %s2562_s1, %s996_s26  ;;  %s2121_s18 = int_to_ptr.vmem [resolvable:$true] %s238_s18 }
  0xe7   : > { %s1306_s5 = scalar_lea.hbm %s211_s22, 16  ;;  %p1309_p4 = scmp.lt.u32.totalorder %s211_s22, %s2562_s1 }
  0xe8   : > { %p1307_p3 = scmp.ne.s32.totalorder %s211_s22, %s1306_s5  ;;  %p1310_p5 = scmp.lt.u32.totalorder %s1956_s8, %s1306_s5 }
  0xe9   : > { %p1312_p7 = scmp.lt.u32.totalorder %s1306_s5, %s211_s22 }
  0xea   : > { %p1311_p6 = por %p1310_p5, %p1309_p4 }
  0xec   : > { %p1313_p8 = por %p1312_p7, %p1311_p6 }
  0xee   : > { %p1314_p9 = pnand %p1313_p8, %p1307_p3 }
  0xf0   : > { %1317 = shalt.err (!%p1314_p9)  }
  0xf1   : > { %s1318_s29 = scalar_lea.vmem %s222_s25, 16  ;;  %p1323_p11 = scmp.lt.s32.totalorder %s222_s25, %s1965_s0 }
  0xf2   : > { %p1319_p10 = scmp.ne.s32.totalorder %s222_s25, %s1318_s29  ;;  %p1324_p12 = scmp.lt.s32.totalorder %s1968_s16, %s1318_s29 }
  0xf4   : > { %p1325_p13 = por %p1324_p12, %p1323_p11 }
  0xf6   : > { %p1326_p0 = pnand %p1325_p13, %p1319_p10 }
  0xf8   : > { %1329 = shalt.err (!%p1326_p0)  }
  0xf9   : > { %224 = dma.hbm_to_vmem [thread:$0]  %s211_s22, 16, %s222_s25, [#allocation2 + $0x9] }
  0xfa   : > { %s2129_s9 = sld [smem:[#allocation4 + %s242_s28]]  ;;  %s246_s10 = scalar_lea.vmem %s1945_s24, 11 }
  0xfb   : > { %s997_s11 = sshll.u32 %s2113_s19, 4  ;;  %s255_s4 = sshll.u32 %s246_s10, 4  ;;  %s2136_s4 = int_to_ptr.vmem [resolvable:$true] %s255_s4 }
  0xfc   : > { %s228_s17 = scalar_lea.hbm %s2562_s1, %s997_s11 }
  0xfd   : > { %s1330_s23 = scalar_lea.hbm %s228_s17, 16  ;;  %p1333_p2 = scmp.lt.u32.totalorder %s228_s17, %s2562_s1 }
  0xfe   : > { %p1331_p1 = scmp.ne.s32.totalorder %s228_s17, %s1330_s23  ;;  %p1334_p3 = scmp.lt.u32.totalorder %s1956_s8, %s1330_s23 }
  0xff   : > { %p1336_p5 = scmp.lt.u32.totalorder %s1330_s23, %s228_s17 }
 0x100   : > { %p1335_p4 = por %p1334_p3, %p1333_p2 }
 0x102   : > { %p1337_p6 = por %p1336_p5, %p1335_p4 }
 0x104   : > { %p1338_p7 = pnand %p1337_p6, %p1331_p1 }
 0x106   : > { %1341 = shalt.err (!%p1338_p7)  }
 0x107   : > { %s1342_s25 = scalar_lea.vmem %s2121_s18, 16  ;;  %p1347_p9 = scmp.lt.s32.totalorder %s2121_s18, %s1965_s0 }
 0x108   : > { %p1343_p8 = scmp.ne.s32.totalorder %s2121_s18, %s1342_s25  ;;  %p1348_p10 = scmp.lt.s32.totalorder %s1968_s16, %s1342_s25 }
 0x10a   : > { %p1349_p11 = por %p1348_p10, %p1347_p9 }
 0x10c   : > { %p1350_p12 = pnand %p1349_p11, %p1343_p8 }
 0x10e   : > { %1353 = shalt.err (!%p1350_p12)  }
 0x10f   : > { %241 = dma.hbm_to_vmem [thread:$0]  %s228_s17, 16, %s2121_s18, [#allocation2 + $0xa] }
 0x110   : > { %s259_s19 = sadd.s32 12, %s1933_s15  ;;  %s263_s27 = scalar_lea.vmem %s1945_s24, 12 }
 0x111   : > { %s2150_s28 = sld [smem:[#allocation4 + %s259_s19]]  ;;  %s272_s26 = sshll.u32 %s263_s27, 4  ;;  %s2153_s26 = int_to_ptr.vmem [resolvable:$true] %s272_s26 }
 0x112   : > { %s998_s21 = sshll.u32 %s2129_s9, 4  ;;  %s276_s20 = sadd.s32 13, %s1933_s15 }
 0x113   : > { %s245_s5 = scalar_lea.hbm %s2562_s1, %s998_s21 }
 0x114   : > { %s1354_s30 = scalar_lea.hbm %s245_s5, 16  ;;  %p1357_p0 = scmp.lt.u32.totalorder %s245_s5, %s2562_s1 }
 0x115   : > { %p1355_p13 = scmp.ne.s32.totalorder %s245_s5, %s1354_s30  ;;  %p1358_p1 = scmp.lt.u32.totalorder %s1956_s8, %s1354_s30 }
 0x116   : > { %p1360_p3 = scmp.lt.u32.totalorder %s1354_s30, %s245_s5 }
 0x117   : > { %p1359_p2 = por %p1358_p1, %p1357_p0 }
 0x119   : > { %p1361_p4 = por %p1360_p3, %p1359_p2 }
 0x11b   : > { %p1362_p5 = pnand %p1361_p4, %p1355_p13 }
 0x11d   : > { %1365 = shalt.err (!%p1362_p5)  }
 0x11e   : > { %s1366_s18 = scalar_lea.vmem %s2136_s4, 16  ;;  %p1371_p7 = scmp.lt.s32.totalorder %s2136_s4, %s1965_s0 }
 0x11f   : > { %p1367_p6 = scmp.ne.s32.totalorder %s2136_s4, %s1366_s18  ;;  %p1372_p8 = scmp.lt.s32.totalorder %s1968_s16, %s1366_s18 }
 0x121   : > { %p1373_p9 = por %p1372_p8, %p1371_p7 }
 0x123   : > { %p1374_p10 = pnand %p1373_p9, %p1367_p6 }
 0x125   : > { %1377 = shalt.err (!%p1374_p10)  }
 0x126   : > { %258 = dma.hbm_to_vmem [thread:$0]  %s245_s5, 16, %s2136_s4, [#allocation2 + $0xb] }
 0x127   : > { %s2169_s9 = sld [smem:[#allocation4 + %s276_s20]]  ;;  %s280_s11 = scalar_lea.vmem %s1945_s24, 13 }
 0x128   : > { %s289_s12 = sshll.u32 %s280_s11, 4  ;;  %s293_s13 = sadd.s32 14, %s1933_s15  ;;  %s2174_s12 = int_to_ptr.vmem [resolvable:$true] %s289_s12 }
 0x129   : > { %s999_s17 = sshll.u32 %s2150_s28, 4  ;;  %s2179_s25 = sld [smem:[#allocation4 + %s293_s13]] }
 0x12a   : > { %s262_s6 = scalar_lea.hbm %s2562_s1, %s999_s17 }
 0x12b   : > { %s1378_s19 = scalar_lea.hbm %s262_s6, 16  ;;  %p1381_p12 = scmp.lt.u32.totalorder %s262_s6, %s2562_s1 }
 0x12c   : > { %p1379_p11 = scmp.ne.s32.totalorder %s262_s6, %s1378_s19  ;;  %p1382_p13 = scmp.lt.u32.totalorder %s1956_s8, %s1378_s19 }
 0x12d   : > { %p1384_p1 = scmp.lt.u32.totalorder %s1378_s19, %s262_s6 }
 0x12e   : > { %p1383_p0 = por %p1382_p13, %p1381_p12 }
 0x130   : > { %p1385_p2 = por %p1384_p1, %p1383_p0 }
 0x132   : > { %p1386_p3 = pnand %p1385_p2, %p1379_p11 }
 0x134   : > { %1389 = shalt.err (!%p1386_p3)  }
 0x135   : > { %s1390_s4 = scalar_lea.vmem %s2153_s26, 16  ;;  %p1395_p5 = scmp.lt.s32.totalorder %s2153_s26, %s1965_s0 }
 0x136   : > { %p1391_p4 = scmp.ne.s32.totalorder %s2153_s26, %s1390_s4  ;;  %p1396_p6 = scmp.lt.s32.totalorder %s1968_s16, %s1390_s4 }
 0x138   : > { %p1397_p7 = por %p1396_p6, %p1395_p5 }
 0x13a   : > { %p1398_p8 = pnand %p1397_p7, %p1391_p4 }
 0x13c   : > { %1401 = shalt.err (!%p1398_p8)  }
 0x13d   : > { %275 = dma.hbm_to_vmem [thread:$0]  %s262_s6, 16, %s2153_s26, [#allocation2 + $0xc] }
 0x13e   : > { %s297_s28 = scalar_lea.vmem %s1945_s24, 14  ;;  %s310_s3 = sadd.s32 15, %s1933_s15 }
 0x13f   : > { %s1000_s22 = sshll.u32 %s2169_s9, 4  ;;  %s306_s5 = sshll.u32 %s297_s28, 4  ;;  %s2197_s5 = int_to_ptr.vmem [resolvable:$true] %s306_s5 }
 0x140   : > { %s279_s29 = scalar_lea.hbm %s2562_s1, %s1000_s22 }
 0x141   : > { %s1402_s10 = scalar_lea.hbm %s279_s29, 16  ;;  %p1405_p10 = scmp.lt.u32.totalorder %s279_s29, %s2562_s1 }
 0x142   : > { %p1403_p9 = scmp.ne.s32.totalorder %s279_s29, %s1402_s10  ;;  %p1406_p11 = scmp.lt.u32.totalorder %s1956_s8, %s1402_s10 }
 0x143   : > { %p1408_p13 = scmp.lt.u32.totalorder %s1402_s10, %s279_s29 }
 0x144   : > { %p1407_p12 = por %p1406_p11, %p1405_p10 }
 0x146   : > { %p1409_p0 = por %p1408_p13, %p1407_p12 }
 0x148   : > { %p1410_p1 = pnand %p1409_p0, %p1403_p9 }
 0x14a   : > { %1413 = shalt.err (!%p1410_p1)  }
 0x14b   : > { %s1414_s26 = scalar_lea.vmem %s2174_s12, 16  ;;  %p1419_p3 = scmp.lt.s32.totalorder %s2174_s12, %s1965_s0 }
 0x14c   : > { %p1415_p2 = scmp.ne.s32.totalorder %s2174_s12, %s1414_s26  ;;  %p1420_p4 = scmp.lt.s32.totalorder %s1968_s16, %s1414_s26 }
 0x14e   : > { %p1421_p5 = por %p1420_p4, %p1419_p3 }
 0x150   : > { %p1422_p6 = pnand %p1421_p5, %p1415_p2 }
 0x152   : > { %1425 = shalt.err (!%p1422_p6)  }
 0x153   : > { %292 = dma.hbm_to_vmem [thread:$0]  %s279_s29, 16, %s2174_s12, [#allocation2 + $0xd] }
 0x154   : > { %s1001_s9 = sshll.u32 %s2179_s25, 4  ;;  %s2210_s13 = sld [smem:[#allocation4 + %s310_s3]] }
 0x155   : > { %s296_s7 = scalar_lea.hbm %s2562_s1, %s1001_s9  ;;  %s314_s6 = scalar_lea.vmem %s1945_s24, 15 }
 0x156   : > { %s1426_s19 = scalar_lea.hbm %s296_s7, 16  ;;  %p1429_p8 = scmp.lt.u32.totalorder %s296_s7, %s2562_s1 }
 0x157   : > { %p1427_p7 = scmp.ne.s32.totalorder %s296_s7, %s1426_s19  ;;  %p1430_p9 = scmp.lt.u32.totalorder %s1956_s8, %s1426_s19 }
 0x158   : > { %p1432_p11 = scmp.lt.u32.totalorder %s1426_s19, %s296_s7 }
 0x159   : > { %p1431_p10 = por %p1430_p9, %p1429_p8 }
 0x15b   : > { %p1433_p12 = por %p1432_p11, %p1431_p10 }
 0x15d   : > { %p1434_p13 = pnand %p1433_p12, %p1427_p7 }
 0x15f   : > { %1437 = shalt.err (!%p1434_p13)  }
 0x160   : > { %s1438_s12 = scalar_lea.vmem %s2197_s5, 16  ;;  %p1443_p1 = scmp.lt.s32.totalorder %s2197_s5, %s1965_s0 }
 0x161   : > { %p1439_p0 = scmp.ne.s32.totalorder %s2197_s5, %s1438_s12  ;;  %p1444_p2 = scmp.lt.s32.totalorder %s1968_s16, %s1438_s12 }
 0x163   : > { %p1445_p3 = por %p1444_p2, %p1443_p1 }
 0x165   : > { %p1446_p4 = pnand %p1445_p3, %p1439_p0 }
 0x167   : > { %1449 = shalt.err (!%p1446_p4)  }
 0x168   : > { %309 = dma.hbm_to_vmem [thread:$0]  %s296_s7, 16, %s2197_s5, [#allocation2 + $0xe] }
 0x169   : > { %s323_s25 = sshll.u32 %s314_s6, 4  ;;  %s327_s4 = sadd.s32 16, %s1933_s15  ;;  %s324_s25 = int_to_ptr.vmem [resolvable:$true] %s323_s25 }
 0x16a   : > { %s2227_s28 = sld [smem:[#allocation4 + %s327_s4]]  ;;  %s331_s3 = scalar_lea.vmem %s1945_s24, 16 }
 0x16b   : > { %s344_s22 = sadd.s32 17, %s1933_s15  ;;  %s1002_s20 = sshll.u32 %s2210_s13, 4 }
 0x16c   : > { %s340_s30 = sshll.u32 %s331_s3, 4  ;;  %s313_s18 = scalar_lea.hbm %s2562_s1, %s1002_s20  ;;  %s2235_s30 = int_to_ptr.vmem [resolvable:$true] %s340_s30 }
 0x16d   : > { %s1450_s11 = scalar_lea.hbm %s313_s18, 16  ;;  %p1453_p6 = scmp.lt.u32.totalorder %s313_s18, %s2562_s1 }
 0x16e   : > { %p1451_p5 = scmp.ne.s32.totalorder %s313_s18, %s1450_s11  ;;  %p1454_p7 = scmp.lt.u32.totalorder %s1956_s8, %s1450_s11 }
 0x16f   : > { %p1456_p9 = scmp.lt.u32.totalorder %s1450_s11, %s313_s18 }
 0x170   : > { %p1455_p8 = por %p1454_p7, %p1453_p6 }
 0x172   : > { %p1457_p10 = por %p1456_p9, %p1455_p8 }
 0x174   : > { %p1458_p11 = pnand %p1457_p10, %p1451_p5 }
 0x176   : > { %1461 = shalt.err (!%p1458_p11)  }
 0x177   : > { %s1462_s5 = scalar_lea.vmem %s324_s25, 16  ;;  %p1467_p13 = scmp.lt.s32.totalorder %s324_s25, %s1965_s0 }
 0x178   : > { %p1463_p12 = scmp.ne.s32.totalorder %s324_s25, %s1462_s5  ;;  %p1468_p0 = scmp.lt.s32.totalorder %s1968_s16, %s1462_s5 }
 0x17a   : > { %p1469_p1 = por %p1468_p0, %p1467_p13 }
 0x17c   : > { %p1470_p2 = pnand %p1469_p1, %p1463_p12 }
 0x17e   : > { %1473 = shalt.err (!%p1470_p2)  }
 0x17f   : > { %326 = dma.hbm_to_vmem [thread:$0]  %s313_s18, 16, %s324_s25, [#allocation2 + $0xf] }
 0x180   : > { %s2243_s13 = sld [smem:[#allocation4 + %s344_s22]]  ;;  %s348_s17 = scalar_lea.vmem %s1945_s24, 17 }
 0x181   : > { %s1003_s23 = sshll.u32 %s2227_s28, 4  ;;  %s357_s7 = sshll.u32 %s348_s17, 4  ;;  %s2250_s7 = int_to_ptr.vmem [resolvable:$true] %s357_s7 }
 0x182   : > { %s330_s27 = scalar_lea.hbm %s2562_s1, %s1003_s23 }
 0x183   : > { %s1474_s21 = scalar_lea.hbm %s330_s27, 16  ;;  %p1477_p4 = scmp.lt.u32.totalorder %s330_s27, %s2562_s1 }
 0x184   : > { %p1475_p3 = scmp.ne.s32.totalorder %s330_s27, %s1474_s21  ;;  %p1478_p5 = scmp.lt.u32.totalorder %s1956_s8, %s1474_s21 }
 0x185   : > { %p1480_p7 = scmp.lt.u32.totalorder %s1474_s21, %s330_s27 }
 0x186   : > { %p1479_p6 = por %p1478_p5, %p1477_p4 }
 0x188   : > { %p1481_p8 = por %p1480_p7, %p1479_p6 }
 0x18a   : > { %p1482_p9 = pnand %p1481_p8, %p1475_p3 }
 0x18c   : > { %1485 = shalt.err (!%p1482_p9)  }
 0x18d   : > { %s1486_s25 = scalar_lea.vmem %s2235_s30, 16  ;;  %p1491_p11 = scmp.lt.s32.totalorder %s2235_s30, %s1965_s0 }
 0x18e   : > { %p1487_p10 = scmp.ne.s32.totalorder %s2235_s30, %s1486_s25  ;;  %p1492_p12 = scmp.lt.s32.totalorder %s1968_s16, %s1486_s25 }
 0x190   : > { %p1493_p13 = por %p1492_p12, %p1491_p11 }
 0x192   : > { %p1494_p0 = pnand %p1493_p13, %p1487_p10 }
 0x194   : > { %1497 = shalt.err (!%p1494_p0)  }
 0x195   : > { %343 = dma.hbm_to_vmem [thread:$0]  %s330_s27, 16, %s2235_s30, [#allocation2 + $0x10] }
 0x196   : > { %s361_s28 = sadd.s32 18, %s1933_s15  ;;  %s365_s3 = scalar_lea.vmem %s1945_s24, 18 }
 0x197   : > { %s2264_s22 = sld [smem:[#allocation4 + %s361_s28]]  ;;  %s374_s20 = sshll.u32 %s365_s3, 4  ;;  %s2267_s20 = int_to_ptr.vmem [resolvable:$true] %s374_s20 }
 0x198   : > { %s1004_s29 = sshll.u32 %s2243_s13, 4  ;;  %s378_s26 = sadd.s32 19, %s1933_s15 }
 0x199   : > { %s347_s11 = scalar_lea.hbm %s2562_s1, %s1004_s29 }
 0x19a   : > { %s1498_s9 = scalar_lea.hbm %s347_s11, 16  ;;  %p1501_p2 = scmp.lt.u32.totalorder %s347_s11, %s2562_s1 }
 0x19b   : > { %p1499_p1 = scmp.ne.s32.totalorder %s347_s11, %s1498_s9  ;;  %p1502_p3 = scmp.lt.u32.totalorder %s1956_s8, %s1498_s9 }
 0x19c   : > { %p1504_p5 = scmp.lt.u32.totalorder %s1498_s9, %s347_s11 }
 0x19d   : > { %p1503_p4 = por %p1502_p3, %p1501_p2 }
 0x19f   : > { %p1505_p6 = por %p1504_p5, %p1503_p4 }
 0x1a1   : > { %p1506_p7 = pnand %p1505_p6, %p1499_p1 }
 0x1a3   : > { %1509 = shalt.err (!%p1506_p7)  }
 0x1a4   : > { %s1510_s30 = scalar_lea.vmem %s2250_s7, 16  ;;  %p1515_p9 = scmp.lt.s32.totalorder %s2250_s7, %s1965_s0 }
 0x1a5   : > { %p1511_p8 = scmp.ne.s32.totalorder %s2250_s7, %s1510_s30  ;;  %p1516_p10 = scmp.lt.s32.totalorder %s1968_s16, %s1510_s30 }
 0x1a7   : > { %p1517_p11 = por %p1516_p10, %p1515_p9 }
 0x1a9   : > { %p1518_p12 = pnand %p1517_p11, %p1511_p8 }
 0x1ab   : > { %1521 = shalt.err (!%p1518_p12)  }
 0x1ac   : > { %360 = dma.hbm_to_vmem [thread:$0]  %s347_s11, 16, %s2250_s7, [#allocation2 + $0x11] }
 0x1ad   : > { %s2283_s13 = sld [smem:[#allocation4 + %s378_s26]]  ;;  %s382_s23 = scalar_lea.vmem %s1945_s24, 19 }
 0x1ae   : > { %s391_s6 = sshll.u32 %s382_s23, 4  ;;  %s395_s19 = sadd.s32 20, %s1933_s15  ;;  %s2288_s6 = int_to_ptr.vmem [resolvable:$true] %s391_s6 }
 0x1af   : > { %s1005_s27 = sshll.u32 %s2264_s22, 4  ;;  %s2293_s25 = sld [smem:[#allocation4 + %s395_s19]] }
 0x1b0   : > { %s364_s4 = scalar_lea.hbm %s2562_s1, %s1005_s27 }
 0x1b1   : > { %s1522_s28 = scalar_lea.hbm %s364_s4, 16  ;;  %p1525_p0 = scmp.lt.u32.totalorder %s364_s4, %s2562_s1 }
 0x1b2   : > { %p1523_p13 = scmp.ne.s32.totalorder %s364_s4, %s1522_s28  ;;  %p1526_p1 = scmp.lt.u32.totalorder %s1956_s8, %s1522_s28 }
 0x1b3   : > { %p1528_p3 = scmp.lt.u32.totalorder %s1522_s28, %s364_s4 }
 0x1b4   : > { %p1527_p2 = por %p1526_p1, %p1525_p0 }
 0x1b6   : > { %p1529_p4 = por %p1528_p3, %p1527_p2 }
 0x1b8   : > { %p1530_p5 = pnand %p1529_p4, %p1523_p13 }
 0x1ba   : > { %1533 = shalt.err (!%p1530_p5)  }
 0x1bb   : > { %s1534_s7 = scalar_lea.vmem %s2267_s20, 16  ;;  %p1539_p7 = scmp.lt.s32.totalorder %s2267_s20, %s1965_s0 }
 0x1bc   : > { %p1535_p6 = scmp.ne.s32.totalorder %s2267_s20, %s1534_s7  ;;  %p1540_p8 = scmp.lt.s32.totalorder %s1968_s16, %s1534_s7 }
 0x1be   : > { %p1541_p9 = por %p1540_p8, %p1539_p7 }
 0x1c0   : > { %p1542_p10 = pnand %p1541_p9, %p1535_p6 }
 0x1c2   : > { %1545 = shalt.err (!%p1542_p10)  }
 0x1c3   : > { %377 = dma.hbm_to_vmem [thread:$0]  %s364_s4, 16, %s2267_s20, [#allocation2 + $0x12] }
 0x1c4   : > { %s399_s22 = scalar_lea.vmem %s1945_s24, 20  ;;  %s412_s10 = sadd.s32 21, %s1933_s15 }
 0x1c5   : > { %s1006_s18 = sshll.u32 %s2283_s13, 4  ;;  %s408_s11 = sshll.u32 %s399_s22, 4  ;;  %s2311_s11 = int_to_ptr.vmem [resolvable:$true] %s408_s11 }
 0x1c6   : > { %s381_s5 = scalar_lea.hbm %s2562_s1, %s1006_s18 }
 0x1c7   : > { %s1546_s17 = scalar_lea.hbm %s381_s5, 16  ;;  %p1549_p12 = scmp.lt.u32.totalorder %s381_s5, %s2562_s1 }
 0x1c8   : > { %p1547_p11 = scmp.ne.s32.totalorder %s381_s5, %s1546_s17  ;;  %p1550_p13 = scmp.lt.u32.totalorder %s1956_s8, %s1546_s17 }
 0x1c9   : > { %p1552_p1 = scmp.lt.u32.totalorder %s1546_s17, %s381_s5 }
 0x1ca   : > { %p1551_p0 = por %p1550_p13, %p1549_p12 }
 0x1cc   : > { %p1553_p2 = por %p1552_p1, %p1551_p0 }
 0x1ce   : > { %p1554_p3 = pnand %p1553_p2, %p1547_p11 }
 0x1d0   : > { %1557 = shalt.err (!%p1554_p3)  }
 0x1d1   : > { %s1558_s20 = scalar_lea.vmem %s2288_s6, 16  ;;  %p1563_p5 = scmp.lt.s32.totalorder %s2288_s6, %s1965_s0 }
 0x1d2   : > { %p1559_p4 = scmp.ne.s32.totalorder %s2288_s6, %s1558_s20  ;;  %p1564_p6 = scmp.lt.s32.totalorder %s1968_s16, %s1558_s20 }
 0x1d4   : > { %p1565_p7 = por %p1564_p6, %p1563_p5 }
 0x1d6   : > { %p1566_p8 = pnand %p1565_p7, %p1559_p4 }
 0x1d8   : > { %1569 = shalt.err (!%p1566_p8)  }
 0x1d9   : > { %394 = dma.hbm_to_vmem [thread:$0]  %s381_s5, 16, %s2288_s6, [#allocation2 + $0x13] }
 0x1da   : > { %s1007_s13 = sshll.u32 %s2293_s25, 4  ;;  %s2324_s19 = sld [smem:[#allocation4 + %s412_s10]] }
 0x1db   : > { %s398_s12 = scalar_lea.hbm %s2562_s1, %s1007_s13  ;;  %s416_s4 = scalar_lea.vmem %s1945_s24, 21 }
 0x1dc   : > { %s1570_s28 = scalar_lea.hbm %s398_s12, 16  ;;  %p1573_p10 = scmp.lt.u32.totalorder %s398_s12, %s2562_s1 }
 0x1dd   : > { %p1571_p9 = scmp.ne.s32.totalorder %s398_s12, %s1570_s28  ;;  %p1574_p11 = scmp.lt.u32.totalorder %s1956_s8, %s1570_s28 }
 0x1de   : > { %p1576_p13 = scmp.lt.u32.totalorder %s1570_s28, %s398_s12 }
 0x1df   : > { %p1575_p12 = por %p1574_p11, %p1573_p10 }
 0x1e1   : > { %p1577_p0 = por %p1576_p13, %p1575_p12 }
 0x1e3   : > { %p1578_p1 = pnand %p1577_p0, %p1571_p9 }
 0x1e5   : > { %1581 = shalt.err (!%p1578_p1)  }
 0x1e6   : > { %s1582_s6 = scalar_lea.vmem %s2311_s11, 16  ;;  %p1587_p3 = scmp.lt.s32.totalorder %s2311_s11, %s1965_s0 }
 0x1e7   : > { %p1583_p2 = scmp.ne.s32.totalorder %s2311_s11, %s1582_s6  ;;  %p1588_p4 = scmp.lt.s32.totalorder %s1968_s16, %s1582_s6 }
 0x1e9   : > { %p1589_p5 = por %p1588_p4, %p1587_p3 }
 0x1eb   : > { %p1590_p6 = pnand %p1589_p5, %p1583_p2 }
 0x1ed   : > { %1593 = shalt.err (!%p1590_p6)  }
 0x1ee   : > { %411 = dma.hbm_to_vmem [thread:$0]  %s398_s12, 16, %s2311_s11, [#allocation2 + $0x14] }
 0x1ef   : > { %s425_s25 = sshll.u32 %s416_s4, 4  ;;  %s429_s7 = sadd.s32 22, %s1933_s15  ;;  %s426_s25 = int_to_ptr.vmem [resolvable:$true] %s425_s25 }
 0x1f0   : > { %s2341_s22 = sld [smem:[#allocation4 + %s429_s7]]  ;;  %s433_s10 = scalar_lea.vmem %s1945_s24, 22 }
 0x1f1   : > { %s446_s18 = sadd.s32 23, %s1933_s15  ;;  %s1008_s26 = sshll.u32 %s2324_s19, 4 }
 0x1f2   : > { %s442_s9 = sshll.u32 %s433_s10, 4  ;;  %s415_s30 = scalar_lea.hbm %s2562_s1, %s1008_s26  ;;  %s2349_s9 = int_to_ptr.vmem [resolvable:$true] %s442_s9 }
 0x1f3   : > { %s1594_s23 = scalar_lea.hbm %s415_s30, 16  ;;  %p1597_p8 = scmp.lt.u32.totalorder %s415_s30, %s2562_s1 }
 0x1f4   : > { %p1595_p7 = scmp.ne.s32.totalorder %s415_s30, %s1594_s23  ;;  %p1598_p9 = scmp.lt.u32.totalorder %s1956_s8, %s1594_s23 }
 0x1f5   : > { %p1600_p11 = scmp.lt.u32.totalorder %s1594_s23, %s415_s30 }
 0x1f6   : > { %p1599_p10 = por %p1598_p9, %p1597_p8 }
 0x1f8   : > { %p1601_p12 = por %p1600_p11, %p1599_p10 }
 0x1fa   : > { %p1602_p13 = pnand %p1601_p12, %p1595_p7 }
 0x1fc   : > { %1605 = shalt.err (!%p1602_p13)  }
 0x1fd   : > { %s1606_s11 = scalar_lea.vmem %s426_s25, 16  ;;  %p1611_p1 = scmp.lt.s32.totalorder %s426_s25, %s1965_s0 }
 0x1fe   : > { %p1607_p0 = scmp.ne.s32.totalorder %s426_s25, %s1606_s11  ;;  %p1612_p2 = scmp.lt.s32.totalorder %s1968_s16, %s1606_s11 }
 0x200   : > { %p1613_p3 = por %p1612_p2, %p1611_p1 }
 0x202   : > { %p1614_p4 = pnand %p1613_p3, %p1607_p0 }
 0x204   : > { %1617 = shalt.err (!%p1614_p4)  }
 0x205   : > { %428 = dma.hbm_to_vmem [thread:$0]  %s415_s30, 16, %s426_s25, [#allocation2 + $0x15] }
 0x206   : > { %s2357_s19 = sld [smem:[#allocation4 + %s446_s18]]  ;;  %s450_s27 = scalar_lea.vmem %s1945_s24, 23 }
 0x207   : > { %s1009_s21 = sshll.u32 %s2341_s22, 4  ;;  %s459_s12 = sshll.u32 %s450_s27, 4  ;;  %s2364_s12 = int_to_ptr.vmem [resolvable:$true] %s459_s12 }
 0x208   : > { %s432_s3 = scalar_lea.hbm %s2562_s1, %s1009_s21 }
 0x209   : > { %s1618_s29 = scalar_lea.hbm %s432_s3, 16  ;;  %p1621_p6 = scmp.lt.u32.totalorder %s432_s3, %s2562_s1 }
 0x20a   : > { %p1619_p5 = scmp.ne.s32.totalorder %s432_s3, %s1618_s29  ;;  %p1622_p7 = scmp.lt.u32.totalorder %s1956_s8, %s1618_s29 }
 0x20b   : > { %p1624_p9 = scmp.lt.u32.totalorder %s1618_s29, %s432_s3 }
 0x20c   : > { %p1623_p8 = por %p1622_p7, %p1621_p6 }
 0x20e   : > { %p1625_p10 = por %p1624_p9, %p1623_p8 }
 0x210   : > { %p1626_p11 = pnand %p1625_p10, %p1619_p5 }
 0x212   : > { %1629 = shalt.err (!%p1626_p11)  }
 0x213   : > { %s1630_s25 = scalar_lea.vmem %s2349_s9, 16  ;;  %p1635_p13 = scmp.lt.s32.totalorder %s2349_s9, %s1965_s0 }
 0x214   : > { %p1631_p12 = scmp.ne.s32.totalorder %s2349_s9, %s1630_s25  ;;  %p1636_p0 = scmp.lt.s32.totalorder %s1968_s16, %s1630_s25 }
 0x216   : > { %p1637_p1 = por %p1636_p0, %p1635_p13 }
 0x218   : > { %p1638_p2 = pnand %p1637_p1, %p1631_p12 }
 0x21a   : > { %1641 = shalt.err (!%p1638_p2)  }
 0x21b   : > { %445 = dma.hbm_to_vmem [thread:$0]  %s432_s3, 16, %s2349_s9, [#allocation2 + $0x16] }
 0x21c   : > { %s463_s22 = sadd.s32 24, %s1933_s15  ;;  %s467_s10 = scalar_lea.vmem %s1945_s24, 24 }
 0x21d   : > { %s2378_s18 = sld [smem:[#allocation4 + %s463_s22]]  ;;  %s476_s26 = sshll.u32 %s467_s10, 4  ;;  %s2381_s26 = int_to_ptr.vmem [resolvable:$true] %s476_s26 }
 0x21e   : > { %s1010_s5 = sshll.u32 %s2357_s19, 4  ;;  %s480_s20 = sadd.s32 25, %s1933_s15 }
 0x21f   : > { %s449_s23 = scalar_lea.hbm %s2562_s1, %s1010_s5 }
 0x220   : > { %s1642_s13 = scalar_lea.hbm %s449_s23, 16  ;;  %p1645_p4 = scmp.lt.u32.totalorder %s449_s23, %s2562_s1 }
 0x221   : > { %p1643_p3 = scmp.ne.s32.totalorder %s449_s23, %s1642_s13  ;;  %p1646_p5 = scmp.lt.u32.totalorder %s1956_s8, %s1642_s13 }
 0x222   : > { %p1648_p7 = scmp.lt.u32.totalorder %s1642_s13, %s449_s23 }
 0x223   : > { %p1647_p6 = por %p1646_p5, %p1645_p4 }
 0x225   : > { %p1649_p8 = por %p1648_p7, %p1647_p6 }
 0x227   : > { %p1650_p9 = pnand %p1649_p8, %p1643_p3 }
 0x229   : > { %1653 = shalt.err (!%p1650_p9)  }
 0x22a   : > { %s1654_s9 = scalar_lea.vmem %s2364_s12, 16  ;;  %p1659_p11 = scmp.lt.s32.totalorder %s2364_s12, %s1965_s0 }
 0x22b   : > { %p1655_p10 = scmp.ne.s32.totalorder %s2364_s12, %s1654_s9  ;;  %p1660_p12 = scmp.lt.s32.totalorder %s1968_s16, %s1654_s9 }
 0x22d   : > { %p1661_p13 = por %p1660_p12, %p1659_p11 }
 0x22f   : > { %p1662_p0 = pnand %p1661_p13, %p1655_p10 }
 0x231   : > { %1665 = shalt.err (!%p1662_p0)  }
 0x232   : > { %462 = dma.hbm_to_vmem [thread:$0]  %s449_s23, 16, %s2364_s12, [#allocation2 + $0x17] }
 0x233   : > { %s2397_s19 = sld [smem:[#allocation4 + %s480_s20]]  ;;  %s484_s21 = scalar_lea.vmem %s1945_s24, 25 }
 0x234   : > { %s493_s4 = sshll.u32 %s484_s21, 4  ;;  %s497_s28 = sadd.s32 26, %s1933_s15  ;;  %s2402_s4 = int_to_ptr.vmem [resolvable:$true] %s493_s4 }
 0x235   : > { %s1011_s3 = sshll.u32 %s2378_s18, 4  ;;  %s2407_s25 = sld [smem:[#allocation4 + %s497_s28]] }
 0x236   : > { %s466_s7 = scalar_lea.hbm %s2562_s1, %s1011_s3 }
 0x237   : > { %s1666_s22 = scalar_lea.hbm %s466_s7, 16  ;;  %p1669_p2 = scmp.lt.u32.totalorder %s466_s7, %s2562_s1 }
 0x238   : > { %p1667_p1 = scmp.ne.s32.totalorder %s466_s7, %s1666_s22  ;;  %p1670_p3 = scmp.lt.u32.totalorder %s1956_s8, %s1666_s22 }
 0x239   : > { %p1672_p5 = scmp.lt.u32.totalorder %s1666_s22, %s466_s7 }
 0x23a   : > { %p1671_p4 = por %p1670_p3, %p1669_p2 }
 0x23c   : > { %p1673_p6 = por %p1672_p5, %p1671_p4 }
 0x23e   : > { %p1674_p7 = pnand %p1673_p6, %p1667_p1 }
 0x240   : > { %1677 = shalt.err (!%p1674_p7)  }
 0x241   : > { %s1678_s12 = scalar_lea.vmem %s2381_s26, 16  ;;  %p1683_p9 = scmp.lt.s32.totalorder %s2381_s26, %s1965_s0 }
 0x242   : > { %p1679_p8 = scmp.ne.s32.totalorder %s2381_s26, %s1678_s12  ;;  %p1684_p10 = scmp.lt.s32.totalorder %s1968_s16, %s1678_s12 }
 0x244   : > { %p1685_p11 = por %p1684_p10, %p1683_p9 }
 0x246   : > { %p1686_p12 = pnand %p1685_p11, %p1679_p8 }
 0x248   : > { %1689 = shalt.err (!%p1686_p12)  }
 0x249   : > { %479 = dma.hbm_to_vmem [thread:$0]  %s466_s7, 16, %s2381_s26, [#allocation2 + $0x18] }
 0x24a   : > { %s501_s18 = scalar_lea.vmem %s1945_s24, 26  ;;  %s514_s17 = sadd.s32 27, %s1933_s15 }
 0x24b   : > { %s1012_s30 = sshll.u32 %s2397_s19, 4  ;;  %s510_s23 = sshll.u32 %s501_s18, 4  ;;  %s2425_s23 = int_to_ptr.vmem [resolvable:$true] %s510_s23 }
 0x24c   : > { %s483_s11 = scalar_lea.hbm %s2562_s1, %s1012_s30 }
 0x24d   : > { %s1690_s27 = scalar_lea.hbm %s483_s11, 16  ;;  %p1693_p0 = scmp.lt.u32.totalorder %s483_s11, %s2562_s1 }
 0x24e   : > { %p1691_p13 = scmp.ne.s32.totalorder %s483_s11, %s1690_s27  ;;  %p1694_p1 = scmp.lt.u32.totalorder %s1956_s8, %s1690_s27 }
 0x24f   : > { %p1696_p3 = scmp.lt.u32.totalorder %s1690_s27, %s483_s11 }
 0x250   : > { %p1695_p2 = por %p1694_p1, %p1693_p0 }
 0x252   : > { %p1697_p4 = por %p1696_p3, %p1695_p2 }
 0x254   : > { %p1698_p5 = pnand %p1697_p4, %p1691_p13 }
 0x256   : > { %1701 = shalt.err (!%p1698_p5)  }
 0x257   : > { %s1702_s26 = scalar_lea.vmem %s2402_s4, 16  ;;  %p1707_p7 = scmp.lt.s32.totalorder %s2402_s4, %s1965_s0 }
 0x258   : > { %p1703_p6 = scmp.ne.s32.totalorder %s2402_s4, %s1702_s26  ;;  %p1708_p8 = scmp.lt.s32.totalorder %s1968_s16, %s1702_s26 }
 0x25a   : > { %p1709_p9 = por %p1708_p8, %p1707_p7 }
 0x25c   : > { %p1710_p10 = pnand %p1709_p9, %p1703_p6 }
 0x25e   : > { %1713 = shalt.err (!%p1710_p10)  }
 0x25f   : > { %496 = dma.hbm_to_vmem [thread:$0]  %s483_s11, 16, %s2402_s4, [#allocation2 + $0x19] }
 0x260   : > { %s1013_s19 = sshll.u32 %s2407_s25, 4  ;;  %s2438_s28 = sld [smem:[#allocation4 + %s514_s17]] }
 0x261   : > { %s500_s6 = scalar_lea.hbm %s2562_s1, %s1013_s19  ;;  %s518_s7 = scalar_lea.vmem %s1945_s24, 27 }
 0x262   : > { %s1714_s22 = scalar_lea.hbm %s500_s6, 16  ;;  %p1717_p12 = scmp.lt.u32.totalorder %s500_s6, %s2562_s1 }
 0x263   : > { %p1715_p11 = scmp.ne.s32.totalorder %s500_s6, %s1714_s22  ;;  %p1718_p13 = scmp.lt.u32.totalorder %s1956_s8, %s1714_s22 }
 0x264   : > { %p1720_p1 = scmp.lt.u32.totalorder %s1714_s22, %s500_s6 }
 0x265   : > { %p1719_p0 = por %p1718_p13, %p1717_p12 }
 0x267   : > { %p1721_p2 = por %p1720_p1, %p1719_p0 }
 0x269   : > { %p1722_p3 = pnand %p1721_p2, %p1715_p11 }
 0x26b   : > { %1725 = shalt.err (!%p1722_p3)  }
 0x26c   : > { %s1726_s4 = scalar_lea.vmem %s2425_s23, 16  ;;  %p1731_p5 = scmp.lt.s32.totalorder %s2425_s23, %s1965_s0 }
 0x26d   : > { %p1727_p4 = scmp.ne.s32.totalorder %s2425_s23, %s1726_s4  ;;  %p1732_p6 = scmp.lt.s32.totalorder %s1968_s16, %s1726_s4 }
 0x26f   : > { %p1733_p7 = por %p1732_p6, %p1731_p5 }
 0x271   : > { %p1734_p8 = pnand %p1733_p7, %p1727_p4 }
 0x273   : > { %1737 = shalt.err (!%p1734_p8)  }
 0x274   : > { %513 = dma.hbm_to_vmem [thread:$0]  %s500_s6, 16, %s2425_s23, [#allocation2 + $0x1a] }
 0x275   : > { %s527_s25 = sshll.u32 %s518_s7, 4  ;;  %s531_s12 = sadd.s32 28, %s1933_s15  ;;  %s528_s25 = int_to_ptr.vmem [resolvable:$true] %s527_s25 }
 0x276   : > { %s532_s18 = sld [smem:[#allocation4 + %s531_s12]]  ;;  %s535_s17 = scalar_lea.vmem %s1945_s24, 28 }
 0x277   : > { %s548_s30 = sadd.s32 29, %s1933_s15  ;;  %s1014_s20 = sshll.u32 %s2438_s28, 4 }
 0x278   : > { %s544_s13 = sshll.u32 %s535_s17, 4  ;;  %s517_s9 = scalar_lea.hbm %s2562_s1, %s1014_s20  ;;  %s2461_s13 = int_to_ptr.vmem [resolvable:$true] %s544_s13 }
 0x279   : > { %s1738_s21 = scalar_lea.hbm %s517_s9, 16  ;;  %p1741_p10 = scmp.lt.u32.totalorder %s517_s9, %s2562_s1 }
 0x27a   : > { %p1739_p9 = scmp.ne.s32.totalorder %s517_s9, %s1738_s21  ;;  %p1742_p11 = scmp.lt.u32.totalorder %s1956_s8, %s1738_s21 }
 0x27b   : > { %p1744_p13 = scmp.lt.u32.totalorder %s1738_s21, %s517_s9 }
 0x27c   : > { %p1743_p12 = por %p1742_p11, %p1741_p10 }
 0x27e   : > { %p1745_p0 = por %p1744_p13, %p1743_p12 }
 0x280   : > { %p1746_p1 = pnand %p1745_p0, %p1739_p9 }
 0x282   : > { %1749 = shalt.err (!%p1746_p1)  }
 0x283   : > { %s1750_s23 = scalar_lea.vmem %s528_s25, 16  ;;  %p1755_p3 = scmp.lt.s32.totalorder %s528_s25, %s1965_s0 }
 0x284   : > { %p1751_p2 = scmp.ne.s32.totalorder %s528_s25, %s1750_s23  ;;  %p1756_p4 = scmp.lt.s32.totalorder %s1968_s16, %s1750_s23 }
 0x286   : > { %p1757_p5 = por %p1756_p4, %p1755_p3 }
 0x288   : > { %p1758_p6 = pnand %p1757_p5, %p1751_p2 }
 0x28a   : > { %1761 = shalt.err (!%p1758_p6)  }
 0x28b   : > { %530 = dma.hbm_to_vmem [thread:$0]  %s517_s9, 16, %s528_s25, [#allocation2 + $0x1b] }
 0x28c   : > { %s2469_s28 = sld [smem:[#allocation4 + %s548_s30]]  ;;  %s552_s3 = scalar_lea.vmem %s1945_s24, 29 }
 0x28d   : > { %s1015_s29 = sshll.u32 %s532_s18, 4  ;;  %s561_s10 = sshll.u32 %s552_s3, 4  ;;  %s562_s10 = int_to_ptr.vmem [resolvable:$true] %s561_s10 }
 0x28e   : > { %s534_s22 = scalar_lea.hbm %s2562_s1, %s1015_s29 }
 0x28f   : > { %s1762_s5 = scalar_lea.hbm %s534_s22, 16  ;;  %p1765_p8 = scmp.lt.u32.totalorder %s534_s22, %s2562_s1 }
 0x290   : > { %p1763_p7 = scmp.ne.s32.totalorder %s534_s22, %s1762_s5  ;;  %p1766_p9 = scmp.lt.u32.totalorder %s1956_s8, %s1762_s5 }
 0x291   : > { %p1768_p11 = scmp.lt.u32.totalorder %s1762_s5, %s534_s22 }
 0x292   : > { %p1767_p10 = por %p1766_p9, %p1765_p8 }
 0x294   : > { %p1769_p12 = por %p1768_p11, %p1767_p10 }
 0x296   : > { %p1770_p13 = pnand %p1769_p12, %p1763_p7 }
 0x298   : > { %1773 = shalt.err (!%p1770_p13)  }
 0x299   : > { %s1774_s25 = scalar_lea.vmem %s2461_s13, 16  ;;  %p1779_p1 = scmp.lt.s32.totalorder %s2461_s13, %s1965_s0 }
 0x29a   : > { %p1775_p0 = scmp.ne.s32.totalorder %s2461_s13, %s1774_s25  ;;  %p1780_p2 = scmp.lt.s32.totalorder %s1968_s16, %s1774_s25 }
 0x29c   : > { %p1781_p3 = por %p1780_p2, %p1779_p1 }
 0x29e   : > { %p1782_p4 = pnand %p1781_p3, %p1775_p0 }
 0x2a0   : > { %1785 = shalt.err (!%p1782_p4)  }
 0x2a1   : > { %547 = dma.hbm_to_vmem [thread:$0]  %s534_s22, 16, %s2461_s13, [#allocation2 + $0x1c] }
 0x2a2   : > { %s565_s18 = sadd.s32 30, %s1933_s15  ;;  %s569_s17 = scalar_lea.vmem %s1945_s24, 30 }
 0x2a3   : > { %s566_s30 = sld [smem:[#allocation4 + %s565_s18]]  ;;  %s1016_s20 = sshll.u32 %s2469_s28, 4 }
 0x2a4   : > { %s578_s11 = sshll.u32 %s569_s17, 4  ;;  %s551_s21 = scalar_lea.hbm %s2562_s1, %s1016_s20  ;;  %s579_s11 = int_to_ptr.vmem [resolvable:$true] %s578_s11 }
 0x2a5   : > { %s582_s26 = sadd.s32 31, %s1933_s15  ;;  %s1786_s19 = scalar_lea.hbm %s551_s21, 16 }
 0x2a6   : > { %p1787_p5 = scmp.ne.s32.totalorder %s551_s21, %s1786_s19  ;;  %p1789_p6 = scmp.lt.u32.totalorder %s551_s21, %s2562_s1 }
 0x2a7   : > { %p1790_p7 = scmp.lt.u32.totalorder %s1956_s8, %s1786_s19  ;;  %p1792_p9 = scmp.lt.u32.totalorder %s1786_s19, %s551_s21 }
 0x2a9   : > { %p1791_p8 = por %p1790_p7, %p1789_p6 }
 0x2ab   : > { %p1793_p10 = por %p1792_p9, %p1791_p8 }
 0x2ad   : > { %p1794_p11 = pnand %p1793_p10, %p1787_p5 }
 0x2af   : > { %1797 = shalt.err (!%p1794_p11)  }
 0x2b0   : > { %s1798_s13 = scalar_lea.vmem %s562_s10, 16  ;;  %p1803_p13 = scmp.lt.s32.totalorder %s562_s10, %s1965_s0 }
 0x2b1   : > { %p1799_p12 = scmp.ne.s32.totalorder %s562_s10, %s1798_s13  ;;  %p1804_p0 = scmp.lt.s32.totalorder %s1968_s16, %s1798_s13 }
 0x2b3   : > { %p1805_p1 = por %p1804_p0, %p1803_p13 }
 0x2b5   : > { %p1806_p2 = pnand %p1805_p1, %p1799_p12 }
 0x2b7   : > { %1809 = shalt.err (!%p1806_p2)  }
 0x2b8   : > { %564 = dma.hbm_to_vmem [thread:$0]  %s551_s21, 16, %s562_s10, [#allocation2 + $0x1d] }
 0x2b9   : > { %s583_s28 = sld [smem:[#allocation4 + %s582_s26]]  ;;  %s586_s29 = scalar_lea.vmem %s1945_s24, 31 }
 0x2ba   : > { %s1017_s6 = sshll.u32 %s566_s30, 4  ;;  %s595_s7 = sshll.u32 %s586_s29, 4  ;;  %s596_s7 = int_to_ptr.vmem [resolvable:$true] %s595_s7 }
 0x2bb   : > { %s568_s4 = scalar_lea.hbm %s2562_s1, %s1017_s6 }
 0x2bc   : > { %s1810_s12 = scalar_lea.hbm %s568_s4, 16  ;;  %p1813_p4 = scmp.lt.u32.totalorder %s568_s4, %s2562_s1 }
 0x2bd   : > { %p1811_p3 = scmp.ne.s32.totalorder %s568_s4, %s1810_s12  ;;  %p1814_p5 = scmp.lt.u32.totalorder %s1956_s8, %s1810_s12 }
 0x2be   : > { %p1816_p7 = scmp.lt.u32.totalorder %s1810_s12, %s568_s4 }
 0x2bf   : > { %p1815_p6 = por %p1814_p5, %p1813_p4 }
 0x2c1   : > { %p1817_p8 = por %p1816_p7, %p1815_p6 }
 0x2c3   : > { %p1818_p9 = pnand %p1817_p8, %p1811_p3 }
 0x2c5   : > { %1821 = shalt.err (!%p1818_p9)  }
 0x2c6   : > { %s1822_s10 = scalar_lea.vmem %s579_s11, 16  ;;  %p1827_p11 = scmp.lt.s32.totalorder %s579_s11, %s1965_s0 }
 0x2c7   : > { %p1823_p10 = scmp.ne.s32.totalorder %s579_s11, %s1822_s10  ;;  %p1828_p12 = scmp.lt.s32.totalorder %s1968_s16, %s1822_s10 }
 0x2c9   : > { %p1829_p13 = por %p1828_p12, %p1827_p11 }
 0x2cb   : > { %p1830_p0 = pnand %p1829_p13, %p1823_p10 }
 0x2cd   : > { %1833 = shalt.err (!%p1830_p0)  }
 0x2ce   : > { %581 = dma.hbm_to_vmem [thread:$0]  %s568_s4, 16, %s579_s11, [#allocation2 + $0x1e] }
 0x2cf   : > { %s1018_s17 = sshll.u32 %s583_s28, 4 }
 0x2d0   : > { %s585_s27 = scalar_lea.hbm %s2562_s1, %s1018_s17 }
 0x2d1   : > { %s1834_s9 = scalar_lea.hbm %s585_s27, 16  ;;  %p1837_p2 = scmp.lt.u32.totalorder %s585_s27, %s2562_s1 }
 0x2d2   : > { %p1835_p1 = scmp.ne.s32.totalorder %s585_s27, %s1834_s9  ;;  %p1838_p3 = scmp.lt.u32.totalorder %s1956_s8, %s1834_s9 }
 0x2d3   : > { %p1840_p5 = scmp.lt.u32.totalorder %s1834_s9, %s585_s27 }
 0x2d4   : > { %p1839_p4 = por %p1838_p3, %p1837_p2 }
 0x2d6   : > { %p1841_p6 = por %p1840_p5, %p1839_p4 }
 0x2d8   : > { %p1842_p7 = pnand %p1841_p6, %p1835_p1 }
 0x2da   : > { %1845 = shalt.err (!%p1842_p7)  }
 0x2db   : > { %s1846_s11 = scalar_lea.vmem %s596_s7, 16  ;;  %p1851_p9 = scmp.lt.s32.totalorder %s596_s7, %s1965_s0 }
 0x2dc   : > { %p1847_p8 = scmp.ne.s32.totalorder %s596_s7, %s1846_s11  ;;  %p1852_p10 = scmp.lt.s32.totalorder %s1968_s16, %s1846_s11 }
 0x2de   : > { %p1853_p11 = por %p1852_p10, %p1851_p9 }
 0x2e0   : > { %p1854_p12 = pnand %p1853_p11, %p1847_p8 }
 0x2e2   : > { %1857 = shalt.err (!%p1854_p12)  }
 0x2e3   : > { %598 = dma.hbm_to_vmem [thread:$0]  %s585_s27, 16, %s596_s7, [#allocation2 + $0x1f] }
 0x2e4   : > { %s2517_s19 = smov 0  }
 0x2e5 LB: >> { %p605_p13 = scmp.lt.s32.totalorder %s1904_s19, 0  ;;  %s606_s23 = ssub.s32 0, %s1904_s19  ;;  %s1904_s19 = sphi %s2517_s19, %s604_s19  }
 0x2e6   : >> { %s1019_s3 = smin.u32 %s1904_s19, %s606_s23  ;;  %s619_s13 = sadd.s32 32, %s1904_s19 }
 0x2e7   : >> { %s608_s28 = sand.u32 31, %s1019_s3   ;;  %p2526_p0 = scmp.lt.s32.totalorder %s619_s13, 96 }
 0x2e8   : >> { %s609_s6 = ssub.s32 0, %s608_s28 }
 0x2e9   : >> { %s2568_s6 = smov (!%p605_p13, %s609_s6), %s608_s28  ;;  %s2570_s13 = smov (!%p2526_p0, %s619_s13), 0 }
 0x2ea   : >> { %p1021_p1 = scmp.lt.s32.totalorder %s2568_s6, 0  ;;  %s615_s7 = sadd.s32 32, %s2568_s6 }
 0x2eb   : >> { %s622_s22 = sadd.s32 %s2570_s13, %s1933_s15 }
 0x2ec   : >> { %s2572_s7 = smov (!%p1021_p1, %s615_s7), %s2568_s6  ;;  %s623_s5 = sld [smem:[#allocation4 + %s622_s22]] }
 0x2ed   : >> { %s2533_s4 = scalar_lea.sflag [#allocation2], %s2572_s7 }
 0x2ee   : >> { %1896 = dma.done.wait %s2533_s4, 16 }
 0x2ef   : >> { %1897 = vsyncadd %s2533_s4, 4294967280  ;;  %s961_s25 = scalar_lea.vmem %s1945_s24, %s1904_s19 }
 0x2f0   : >> { %s962_s30 = scalar_lea.vmem %s961_s25, 32 }
 0x2f1   : >> { %s641_s20 = sshll.u32 %s962_s30, 4  ;;  %s642_s20 = int_to_ptr.vmem [resolvable:$true] %s641_s20 }
 0x2f2   : >> { %s1023_s12 = sshll.u32 %s623_s5, 4 }
 0x2f3   : >> { %s632_s17 = scalar_lea.hbm %s2562_s1, %s1023_s12 }
 0x2f4   : >> { %s1858_s27 = scalar_lea.hbm %s632_s17, 16  ;;  %p1863_p5 = scmp.lt.u32.totalorder %s632_s17, %s2562_s1 }
 0x2f5   : >> { %p1859_p2 = scmp.ne.s32.totalorder %s632_s17, %s1858_s27  ;;  %p1864_p6 = scmp.lt.u32.totalorder %s1956_s8, %s1858_s27 }
 0x2f6   : >> { %p1866_p8 = scmp.lt.u32.totalorder %s1858_s27, %s632_s17 }
 0x2f7   : >> { %p1860_p3 = pnand %p1859_p2, %p2526_p0  ;;  %p1865_p7 = por %p1864_p6, %p1863_p5 }
 0x2f9   : >> { %p1861_p4 = pneg %p1860_p3  ;;  %p1867_p9 = por %p1866_p8, %p1865_p7 }
 0x2fb   : >> { %p1868_p10 = pnand %p1867_p9, %p1861_p4 }
 0x2fd   : >> { %1871 = shalt.err (!%p1868_p10)  }
 0x2fe   : >> { %s1872_s26 = scalar_lea.vmem %s642_s20, 16  ;;  %p1879_p1 = scmp.lt.s32.totalorder %s642_s20, %s1965_s0 }
 0x2ff   : >> { %p1873_p11 = scmp.ne.s32.totalorder %s642_s20, %s1872_s26  ;;  %p1880_p2 = scmp.lt.s32.totalorder %s1968_s16, %s1872_s26 }
 0x301   : >> { %p1874_p12 = pnand %p1873_p11, %p2526_p0  ;;  %p1881_p3 = por %p1880_p2, %p1879_p1 }
 0x303   : >> { %p1875_p13 = pneg %p1874_p12 }
 0x305   : >> { %p1882_p5 = pnand %p1881_p3, %p1875_p13 }
 0x307   : >> { %1885 = shalt.err (!%p1882_p5)  }
 0x308   : >> { %1059 = dma.hbm_to_vmem [thread:$0]  (%p2526_p0), %s632_s17, 16, %s642_s20, %s2533_s4 }
 0x309   : >> { %s604_s19 = sadd.s32 1, %s1904_s19  }
 0x30a   : >> { %p601_p4 = scmp.ge.s32.totalorder %s604_s19, 96  }
 0x30c   : > { %603 = sbr.rel (!%p601_p4) target bundleno = 741 (0x2e5), region = 310 }
 0x313 PF: > { %s18_s14 = sadd.s32 1, %s1900_s14  }
 0x314   : > { %p15_p6 = scmp.ge.s32.totalorder %s18_s14, 3  }
 0x316   :  { %17 = sbr.rel (!%p15_p6) target bundleno = 16 (0x10), region = 321 }
 0x31d   :  { %667 = vsyncmov [#allocation2] }
 0x320   :  { %s668_s11 = vpop.sfrf %667 }
 0x321   :  { %p1026_p7 = scmp.ne.s32.totalorder %s668_s11, 0 }
 0x323   :  { %672 = shalt.err (%p1026_p7)  }
 0x324   :  { %674 = vsyncmov [#allocation2 + $0x1] }
 0x327   :  { %s675_s23 = vpop.sfrf %674 }
 0x328   :  { %p1027_p0 = scmp.ne.s32.totalorder %s675_s23, 0 }
 0x32a   :  { %679 = shalt.err (%p1027_p0)  }
 0x32b   :  { %681 = vsyncmov [#allocation2 + $0x2] }
 0x32e   :  { %s682_s3 = vpop.sfrf %681 }
 0x32f   :  { %p1028_p8 = scmp.ne.s32.totalorder %s682_s3, 0 }
 0x331   :  { %686 = shalt.err (%p1028_p8)  }
 0x332   :  { %688 = vsyncmov [#allocation2 + $0x3] }
 0x335   :  { %s689_s15 = vpop.sfrf %688 }
 0x336   :  { %p1029_p9 = scmp.ne.s32.totalorder %s689_s15, 0 }
 0x338   :  { %693 = shalt.err (%p1029_p9)  }
 0x339   :  { %695 = vsyncmov [#allocation2 + $0x4] }
 0x33c   :  { %s696_s24 = vpop.sfrf %695 }
 0x33d   :  { %p1030_p10 = scmp.ne.s32.totalorder %s696_s24, 0 }
 0x33f   :  { %700 = shalt.err (%p1030_p10)  }
 0x340   :  { %702 = vsyncmov [#allocation2 + $0x5] }
 0x343   :  { %s703_s1 = vpop.sfrf %702 }
 0x344   :  { %p1031_p11 = scmp.ne.s32.totalorder %s703_s1, 0 }
 0x346   :  { %707 = shalt.err (%p1031_p11)  }
 0x347   :  { %709 = vsyncmov [#allocation2 + $0x6] }
 0x34a   :  { %s710_s2 = vpop.sfrf %709 }
 0x34b   :  { %p1032_p12 = scmp.ne.s32.totalorder %s710_s2, 0 }
 0x34d   :  { %714 = shalt.err (%p1032_p12)  }
 0x34e   :  { %716 = vsyncmov [#allocation2 + $0x7] }
 0x351   :  { %s717_s14 = vpop.sfrf %716 }
 0x352   :  { %p1033_p13 = scmp.ne.s32.totalorder %s717_s14, 0 }
 0x354   :  { %721 = shalt.err (%p1033_p13)  }
 0x355   :  { %723 = vsyncmov [#allocation2 + $0x8] }
 0x358   :  { %s724_s8 = vpop.sfrf %723 }
 0x359   :  { %p1034_p1 = scmp.ne.s32.totalorder %s724_s8, 0 }
 0x35b   :  { %728 = shalt.err (%p1034_p1)  }
 0x35c   :  { %730 = vsyncmov [#allocation2 + $0x9] }
 0x35f   :  { %s731_s0 = vpop.sfrf %730 }
 0x360   :  { %p1035_p2 = scmp.ne.s32.totalorder %s731_s0, 0 }
 0x362   :  { %735 = shalt.err (%p1035_p2)  }
 0x363   :  { %737 = vsyncmov [#allocation2 + $0xa] }
 0x366   :  { %s738_s16 = vpop.sfrf %737 }
 0x367   :  { %p1036_p3 = scmp.ne.s32.totalorder %s738_s16, 0 }
 0x369   :  { %742 = shalt.err (%p1036_p3)  }
 0x36a   :  { %744 = vsyncmov [#allocation2 + $0xb] }
 0x36d   :  { %s745_s19 = vpop.sfrf %744 }
 0x36e   :  { %p1037_p5 = scmp.ne.s32.totalorder %s745_s19, 0 }
 0x370   :  { %749 = shalt.err (%p1037_p5)  }
 0x371   :  { %751 = vsyncmov [#allocation2 + $0xc] }
 0x374   :  { %s752_s13 = vpop.sfrf %751 }
 0x375   :  { %p1038_p4 = scmp.ne.s32.totalorder %s752_s13, 0 }
 0x377   :  { %756 = shalt.err (%p1038_p4)  }
 0x378   :  { %758 = vsyncmov [#allocation2 + $0xd] }
 0x37b   :  { %s759_s28 = vpop.sfrf %758 }
 0x37c   :  { %p1039_p6 = scmp.ne.s32.totalorder %s759_s28, 0 }
 0x37e   :  { %763 = shalt.err (%p1039_p6)  }
 0x37f   :  { %765 = vsyncmov [#allocation2 + $0xe] }
 0x382   :  { %s766_s29 = vpop.sfrf %765 }
 0x383   :  { %p1040_p7 = scmp.ne.s32.totalorder %s766_s29, 0 }
 0x385   :  { %770 = shalt.err (%p1040_p7)  }
 0x386   :  { %772 = vsyncmov [#allocation2 + $0xf] }
 0x389   :  { %s773_s6 = vpop.sfrf %772 }
 0x38a   :  { %p1041_p0 = scmp.ne.s32.totalorder %s773_s6, 0 }
 0x38c   :  { %777 = shalt.err (%p1041_p0)  }
 0x38d   :  { %779 = vsyncmov [#allocation2 + $0x10] }
 0x390   :  { %s780_s7 = vpop.sfrf %779 }
 0x391   :  { %p1042_p8 = scmp.ne.s32.totalorder %s780_s7, 0 }
 0x393   :  { %784 = shalt.err (%p1042_p8)  }
 0x394   :  { %786 = vsyncmov [#allocation2 + $0x11] }
 0x397   :  { %s787_s22 = vpop.sfrf %786 }
 0x398   :  { %p1043_p9 = scmp.ne.s32.totalorder %s787_s22, 0 }
 0x39a   :  { %791 = shalt.err (%p1043_p9)  }
 0x39b   :  { %793 = vsyncmov [#allocation2 + $0x12] }
 0x39e   :  { %s794_s5 = vpop.sfrf %793 }
 0x39f   :  { %p1044_p10 = scmp.ne.s32.totalorder %s794_s5, 0 }
 0x3a1   :  { %798 = shalt.err (%p1044_p10)  }
 0x3a2   :  { %800 = vsyncmov [#allocation2 + $0x13] }
 0x3a5   :  { %s801_s4 = vpop.sfrf %800 }
 0x3a6   :  { %p1045_p11 = scmp.ne.s32.totalorder %s801_s4, 0 }
 0x3a8   :  { %805 = shalt.err (%p1045_p11)  }
 0x3a9   :  { %807 = vsyncmov [#allocation2 + $0x14] }
 0x3ac   :  { %s808_s12 = vpop.sfrf %807 }
 0x3ad   :  { %p1046_p12 = scmp.ne.s32.totalorder %s808_s12, 0 }
 0x3af   :  { %812 = shalt.err (%p1046_p12)  }
 0x3b0   :  { %814 = vsyncmov [#allocation2 + $0x15] }
 0x3b3   :  { %s815_s25 = vpop.sfrf %814 }
 0x3b4   :  { %p1047_p13 = scmp.ne.s32.totalorder %s815_s25, 0 }
 0x3b6   :  { %819 = shalt.err (%p1047_p13)  }
 0x3b7   :  { %821 = vsyncmov [#allocation2 + $0x16] }
 0x3ba   :  { %s822_s18 = vpop.sfrf %821 }
 0x3bb   :  { %p1048_p1 = scmp.ne.s32.totalorder %s822_s18, 0 }
 0x3bd   :  { %826 = shalt.err (%p1048_p1)  }
 0x3be   :  { %828 = vsyncmov [#allocation2 + $0x17] }
 0x3c1   :  { %s829_s10 = vpop.sfrf %828 }
 0x3c2   :  { %p1049_p2 = scmp.ne.s32.totalorder %s829_s10, 0 }
 0x3c4   :  { %833 = shalt.err (%p1049_p2)  }
 0x3c5   :  { %835 = vsyncmov [#allocation2 + $0x18] }
 0x3c8   :  { %s836_s17 = vpop.sfrf %835 }
 0x3c9   :  { %p1050_p3 = scmp.ne.s32.totalorder %s836_s17, 0 }
 0x3cb   :  { %840 = shalt.err (%p1050_p3)  }
 0x3cc   :  { %842 = vsyncmov [#allocation2 + $0x19] }
 0x3cf   :  { %s843_s30 = vpop.sfrf %842 }
 0x3d0   :  { %p1051_p5 = scmp.ne.s32.totalorder %s843_s30, 0 }
 0x3d2   :  { %847 = shalt.err (%p1051_p5)  }
 0x3d3   :  { %849 = vsyncmov [#allocation2 + $0x1a] }
 0x3d6   :  { %s850_s20 = vpop.sfrf %849 }
 0x3d7   :  { %p1052_p4 = scmp.ne.s32.totalorder %s850_s20, 0 }
 0x3d9   :  { %854 = shalt.err (%p1052_p4)  }
 0x3da   :  { %856 = vsyncmov [#allocation2 + $0x1b] }
 0x3dd   :  { %s857_s27 = vpop.sfrf %856 }
 0x3de   :  { %p1053_p6 = scmp.ne.s32.totalorder %s857_s27, 0 }
 0x3e0   :  { %861 = shalt.err (%p1053_p6)  }
 0x3e1   :  { %863 = vsyncmov [#allocation2 + $0x1c] }
 0x3e4   :  { %s864_s9 = vpop.sfrf %863 }
 0x3e5   :  { %p1054_p7 = scmp.ne.s32.totalorder %s864_s9, 0 }
 0x3e7   :  { %868 = shalt.err (%p1054_p7)  }
 0x3e8   :  { %870 = vsyncmov [#allocation2 + $0x1d] }
 0x3eb   :  { %s871_s21 = vpop.sfrf %870 }
 0x3ec   :  { %p1055_p0 = scmp.ne.s32.totalorder %s871_s21, 0 }
 0x3ee   :  { %875 = shalt.err (%p1055_p0)  }
 0x3ef   :  { %877 = vsyncmov [#allocation2 + $0x1e] }
 0x3f2   :  { %s878_s26 = vpop.sfrf %877 }
 0x3f3   :  { %p1056_p8 = scmp.ne.s32.totalorder %s878_s26, 0 }
 0x3f5   :  { %882 = shalt.err (%p1056_p8)  }
 0x3f6   :  { %884 = vsyncmov [#allocation2 + $0x1f] }
 0x3f9   :  { %s885_s11 = vpop.sfrf %884 }
 0x3fa   :  { %p1057_p9 = scmp.ne.s32.totalorder %s885_s11, 0 }
 0x3fc   :  { %889 = shalt.err (%p1057_p9)  }

</bundles_post_ra>
